<compile_context>
chip_gen: v7x
topology: tpu7x:2x2x1
jax: 0.10.0
libtpu: 0.0.40
codegen_flags: <defaults>
</compile_context>

<pallas_src>
import math
from functools import partial

import jax
import jax.numpy as jnp
from jax import lax
from jax.experimental import pallas as pl
from jax.experimental.pallas import tpu as pltpu

HEAD_DIM = 64
LN_EPS = 1e-5
NEG_INF = -1e30

PARAM_ORDER = [
    "ln1_g", "ln1_b",
    "wq", "bq", "wk", "bk", "wv", "bv", "wo", "bo",
    "qn_g", "qn_b", "kn_g", "kn_b",
    "ln2_g", "ln2_b",
    "w_up", "b_up", "w_gate", "b_gate", "w_down", "b_down",
]
BF16_WEIGHTS = {"wq", "wk", "wv", "wo", "w_up", "w_gate", "w_down"}


def _layernorm_onepass(v, g, b):
    # Mathematically identical to torch LayerNorm; one-pass variance keeps the two
    # reductions independent (better VLIW packing).
    mu = jnp.mean(v, axis=-1, keepdims=True)
    ms = jnp.mean(v * v, axis=-1, keepdims=True)
    var = ms - mu * mu
    return (v - mu) * lax.rsqrt(var + LN_EPS) * g + b


def _layernorm_ref(v, g, b):
    mu = jnp.mean(v, axis=-1, keepdims=True)
    var = jnp.mean((v - mu) ** 2, axis=-1, keepdims=True)
    return (v - mu) * lax.rsqrt(var + LN_EPS) * g + b


def _gelu_exact(x):
    # matches torch.nn.GELU() (approximate='none'). Note: the tanh-approx GELU would land on
    # the EUP slot (cheaper on v6e/v7x) but changes the module's numerics, so it is not used.
    return 0.5 * x * (1.0 + lax.erf(x * (1.0 / math.sqrt(2.0))))


def transformer_block_kernel(
    x_ref, bias_ref,
    ln1_g, ln1_b,
    wq, bq, wk, bk, wv, bv, wo, bo,
    qn_g, qn_b, kn_g, kn_b,
    ln2_g, ln2_b,
    w_up, b_up, w_gate, b_gate, w_down, b_down,
    out_ref,
):
    x = x_ref[...]                 # (B, L, D) f32, B = batch tile
    B, L, D = x.shape
    H = D // HEAD_DIM
    dot = partial(jnp.dot, preferred_element_type=jnp.float32)

    # Flatten (batch, seq) so every dense matmul sees M = B*L rows on the MXU.
    xf = x.reshape(B * L, D)

    # ---------------- Self attention ----------------
    h = _layernorm_onepass(xf, ln1_g[...], ln1_b[...])
    hb = h.astype(jnp.bfloat16)
    q = _layernorm_onepass(dot(hb, wq[...]) + bq[...], qn_g[...], qn_b[...])
    k = _layernorm_onepass(dot(hb, wk[...]) + bk[...], kn_g[...], kn_b[...])
    v = dot(hb, wv[...]) + bv[...]

    qb = q.astype(jnp.bfloat16).reshape(B, L, D)
    kb = k.astype(jnp.bfloat16).reshape(B, L, D)
    vb = v.astype(jnp.bfloat16).reshape(B, L, D)

    bias = bias_ref[...]           # (B, L, L) f32 additive mask (0 / -1e30)
    scale = 1.0 / math.sqrt(HEAD_DIM)

    # Per-head scores/softmax/PV (tiny L); single full-K output projection afterwards.
    head_outs = []
    for hh in range(H):
        lo = hh * HEAD_DIM
        qh = qb[:, :, lo:lo + HEAD_DIM]
        kh = kb[:, :, lo:lo + HEAD_DIM]
        vh = vb[:, :, lo:lo + HEAD_DIM]
        s = jnp.einsum("bqe,bke->bqk", qh, kh,
                       preferred_element_type=jnp.float32) * scale + bias
        m = jnp.max(s, axis=-1, keepdims=True)
        e = jnp.exp(s - m)
        p = e * pl.reciprocal(jnp.sum(e, axis=-1, keepdims=True), approx=True)
        oh = jnp.einsum("bqk,bke->bqe", p.astype(jnp.bfloat16), vh,
                        preferred_element_type=jnp.float32)
        head_outs.append(oh.astype(jnp.bfloat16))

    attn_cat = jnp.concatenate(head_outs, axis=-1).reshape(B * L, D)   # bf16
    xf = xf + dot(attn_cat, wo[...]) + bo[...]                         # one full-K matmul

    # ---------------- Gated feed-forward ----------------
    # TODO(synk): for d_model > 1024 (weights > ~VMEM/2, esp. v7x) stream/tile the 4*D
    # hidden dim (column blocks of w_up/w_gate, row blocks of w_down, resident f32 acc).
    h2 = _layernorm_onepass(xf, ln2_g[...], ln2_b[...])
    h2b = h2.astype(jnp.bfloat16)
    main = dot(h2b, w_up[...]) + b_up[...]
    gate = dot(h2b, w_gate[...]) + b_gate[...]
    ffin = (_gelu_exact(gate) * main).astype(jnp.bfloat16)
    ff = dot(ffin, w_down[...]) + b_down[...]

    out_ref[...] = (xf + ff).reshape(B, L, D)


def _tpu_config():
    """Pick batch-tile target rows, VMEM limit and minimum grid size per TPU generation."""
    try:
        cap = int(pltpu.get_tpu_info().vmem_capacity_bytes)
    except Exception:
        cap = None
    if cap is not None and cap <= 80 * 1024 * 1024:
        # v7x-class: 64 MiB VMEM/TC, 2 TCs/chip -> modest tiles, headroom below physical
        # capacity, and >= 2 grid steps so both TensorCores get a "parallel" slice.
        return {"target_rows": 256, "vmem_limit": 56 * 1024 * 1024, "min_grid": 2}
    if cap is not None:
        # v5e/v6e: 128 MiB VMEM -> bigger activation tiles amortize MXU weight staging
        # and per-grid-step overhead.
        return {"target_rows": 512, "vmem_limit": 100 * 1024 * 1024, "min_grid": 1}
    # Unknown backend: previous known-good settings.
    return {"target_rows": 256, "vmem_limit": 64 * 1024 * 1024, "min_grid": 1}


def _pick_batch_tile(n, seq_len, target_rows=256, min_grid=1):
    """Largest divisor of n with tile*seq_len <= target_rows and n // tile >= min_grid."""
    max_tile = max(1, target_rows // max(seq_len, 1))
    max_tile = min(max_tile, max(1, n // max(min_grid, 1)))
    tile = 1
    for t in range(1, min(n, max_tile) + 1):
        if n % t == 0:
            tile = t
    return tile


def transformer_block_pallas(x, padding_mask, params, batch_tile=None):
    N, L, D = x.shape
    pm = padding_mask.astype(jnp.float32)

    # Precompute the additive attention bias once in the wrapper (lane-dense (N, L, L)).
    eye = jnp.eye(L, dtype=jnp.float32)
    allowed = jnp.maximum(pm[:, :, None] * pm[:, None, :], eye[None, :, :]) > 0.0
    bias = jnp.where(allowed, 0.0, NEG_INF).astype(jnp.float32)

    # Big matrices -> bf16 (f32 accumulation in-kernel); LN params & biases stay f32.
    weights = [
        params[k].astype(jnp.bfloat16) if k in BF16_WEIGHTS
        else params[k].astype(jnp.float32)
        for k in PARAM_ORDER
    ]

    cfg = _tpu_config()
    bt = batch_tile if batch_tile is not None else _pick_batch_tile(
        N, L, target_rows=cfg["target_rows"], min_grid=cfg["min_grid"])
    assert N % bt == 0, "batch tile must divide batch"
    grid = (N // bt,)

    def weight_spec(a):
        nd = a.ndim
        # Grid-invariant operand: single-buffer it (no point double-buffering weights).
        return pl.BlockSpec(a.shape, lambda b, _nd=nd: (0,) * _nd,
                            pipeline_mode=pl.Buffered(1))

    in_specs = [
        pl.BlockSpec((bt, L, D), lambda b: (b, 0, 0)),   # x
        pl.BlockSpec((bt, L, L), lambda b: (b, 0, 0)),   # additive attention mask bias
    ] + [weight_spec(w) for w in weights]

    out_spec = pl.BlockSpec((bt, L, D), lambda b: (b, 0, 0))

    return pl.pallas_call(
        transformer_block_kernel,
        out_shape=jax.ShapeDtypeStruct((N, L, D), jnp.float32),
        grid=grid,
        in_specs=in_specs,
        out_specs=out_spec,
        compiler_params=pltpu.CompilerParams(
            dimension_semantics=("parallel",),
            vmem_limit_bytes=cfg["vmem_limit"],
        ),
    )(x.astype(jnp.float32), bias, *weights)


# ---------------- pure-JAX reference (mirrors PyTorch semantics) ----------------
# matmul_dtype=jnp.bfloat16 emulates the kernel's bf16 matmuls with f32 accumulation;
# f32 gives the full-precision reference.
def transformer_block_ref(x, padding_mask, p, matmul_dtype=jnp.float32):
    N, L, D = x.shape
    H = D // HEAD_DIM
    pm = padding_mask.astype(jnp.float32)

    def mm(a, b):
        return jnp.dot(a.astype(matmul_dtype), b.astype(matmul_dtype),
                       preferred_element_type=jnp.float32)

    h = _layernorm_ref(x, p["ln1_g"], p["ln1_b"])
    q = _layernorm_ref(mm(h, p["wq"]) + p["bq"], p["qn_g"], p["qn_b"])
    k = _layernorm_ref(mm(h, p["wk"]) + p["bk"], p["kn_g"], p["kn_b"])
    v = mm(h, p["wv"]) + p["bv"]

    q = q.reshape(N, L, H, HEAD_DIM).transpose(0, 2, 1, 3)
    k = k.reshape(N, L, H, HEAD_DIM).transpose(0, 2, 1, 3)
    v = v.reshape(N, L, H, HEAD_DIM).transpose(0, 2, 1, 3)

    eye = jnp.eye(L)
    mask = jnp.maximum(pm[:, None, :] * pm[:, :, None], eye) > 0  # (N, L, L)
    s = jnp.einsum("nhqe,nhke->nhqk", q.astype(matmul_dtype), k.astype(matmul_dtype),
                   preferred_element_type=jnp.float32) / math.sqrt(HEAD_DIM)
    s = jnp.where(mask[:, None], s, NEG_INF)
    pattn = jax.nn.softmax(s, axis=-1)
    o = jnp.einsum("nhqk,nhke->nhqe", pattn.astype(matmul_dtype), v.astype(matmul_dtype),
                   preferred_element_type=jnp.float32)
    o = o.transpose(0, 2, 1, 3).reshape(N, L, D)
    x = x + mm(o, p["wo"]) + p["bo"]

    h2 = _layernorm_ref(x, p["ln2_g"], p["ln2_b"])
    main = mm(h2, p["w_up"]) + p["b_up"]
    gate = mm(h2, p["w_gate"]) + p["b_gate"]
    x = x + mm(_gelu_exact(gate) * main, p["w_down"]) + p["b_down"]
    return x


def init_params(key, d_model):
    ks = jax.random.split(key, 16)
    dh = d_model * 4
    s_in = 1.0 / math.sqrt(d_model)
    s_hid = 1.0 / math.sqrt(dh)

    def lin(k, din, dout, scale):
        return jax.random.normal(k, (din, dout), jnp.float32) * scale

    p = {
        "ln1_g": 1.0 + 0.1 * jax.random.normal(ks[0], (1, d_model), jnp.float32),
        "ln1_b": 0.1 * jax.random.normal(ks[1], (1, d_model), jnp.float32),
        "wq": lin(ks[2], d_model, d_model, s_in),
        "bq": 0.01 * jax.random.normal(ks[3], (1, d_model), jnp.float32),
        "wk": lin(ks[4], d_model, d_model, s_in),
        "bk": 0.01 * jax.random.normal(ks[5], (1, d_model), jnp.float32),
        "wv": lin(ks[6], d_model, d_model, s_in),
        "bv": 0.01 * jax.random.normal(ks[7], (1, d_model), jnp.float32),
        "wo": lin(ks[8], d_model, d_model, s_in),
        "bo": 0.01 * jax.random.normal(ks[9], (1, d_model), jnp.float32),
        "qn_g": 1.0 + 0.1 * jax.random.normal(ks[10], (1, d_model), jnp.float32),
        "qn_b": 0.1 * jax.random.normal(ks[11], (1, d_model), jnp.float32),
        "kn_g": 1.0 + 0.1 * jax.random.normal(ks[12], (1, d_model), jnp.float32),
        "kn_b": 0.1 * jax.random.normal(ks[13], (1, d_model), jnp.float32),
        "ln2_g": 1.0 + 0.1 * jax.random.normal(ks[14], (1, d_model), jnp.float32),
        "ln2_b": 0.1 * jax.random.normal(ks[15], (1, d_model), jnp.float32),
    }
    ks2 = jax.random.split(jax.random.fold_in(key, 1), 6)
    p.update({
        "w_up": lin(ks2[0], d_model, dh, s_in),
        "b_up": 0.01 * jax.random.normal(ks2[1], (1, dh), jnp.float32),
        "w_gate": lin(ks2[2], d_model, dh, s_in),
        "b_gate": 0.01 * jax.random.normal(ks2[3], (1, dh), jnp.float32),
        "w_down": lin(ks2[4], dh, d_model, s_hid),
        "b_down": 0.01 * jax.random.normal(ks2[5], (1, d_model), jnp.float32),
    })
    return p


if __name__ == "__main__":
    N, L, D = 2, 8, 128   # d_model=128 -> 2 heads of 64 (full LDLM uses d_model=1024)
    key = jax.random.PRNGKey(0)
    kx, kp, km = jax.random.split(key, 3)

    x = jax.random.normal(kx, (N, L, D), jnp.float32)
    padding_mask = (jax.random.uniform(km, (N, L)) > 0.3).astype(jnp.float32)
    params = init_params(kp, D)

    out = transformer_block_pallas(x, padding_mask, params)
    out = jax.block_until_ready(out)
    assert out.shape == (N, L, D) and out.dtype == jnp.float32

    # Tight check against a reference that emulates the kernel's bf16 matmul inputs.
    ref_bf16 = transformer_block_ref(x, padding_mask, params, matmul_dtype=jnp.bfloat16)
    err_b = jnp.max(jnp.abs(out - ref_bf16))
    assert jnp.allclose(out, ref_bf16, atol=1e-2, rtol=1e-2), \
        f"max abs err vs bf16-emulated ref {err_b}"

    # Loose sanity check against the full-f32 reference (bf16 matmul rounding budget).
    ref_f32 = transformer_block_ref(x, padding_mask, params, matmul_dtype=jnp.float32)
    err_f = jnp.max(jnp.abs(out - ref_f32))
    assert jnp.allclose(out, ref_f32, atol=1e-1, rtol=1e-1), \
        f"max abs err vs f32 ref {err_f}"

    print("KERNEL_OK")
</pallas_src>

<mosaic_0001>
module attributes {stable_mosaic.version = 11 : i64} {
  func.func @transformer_block_kernel(%arg0: i32, %arg1: memref<2x8x128xf32, #tpu.memory_space<vmem>>, %arg2: memref<2x8x8xf32, #tpu.memory_space<vmem>>, %arg3: memref<1x128xf32, #tpu.memory_space<vmem>>, %arg4: memref<1x128xf32, #tpu.memory_space<vmem>>, %arg5: memref<128x128xbf16, #tpu.memory_space<vmem>>, %arg6: memref<1x128xf32, #tpu.memory_space<vmem>>, %arg7: memref<128x128xbf16, #tpu.memory_space<vmem>>, %arg8: memref<1x128xf32, #tpu.memory_space<vmem>>, %arg9: memref<128x128xbf16, #tpu.memory_space<vmem>>, %arg10: memref<1x128xf32, #tpu.memory_space<vmem>>, %arg11: memref<128x128xbf16, #tpu.memory_space<vmem>>, %arg12: memref<1x128xf32, #tpu.memory_space<vmem>>, %arg13: memref<1x128xf32, #tpu.memory_space<vmem>>, %arg14: memref<1x128xf32, #tpu.memory_space<vmem>>, %arg15: memref<1x128xf32, #tpu.memory_space<vmem>>, %arg16: memref<1x128xf32, #tpu.memory_space<vmem>>, %arg17: memref<1x128xf32, #tpu.memory_space<vmem>>, %arg18: memref<1x128xf32, #tpu.memory_space<vmem>>, %arg19: memref<128x512xbf16, #tpu.memory_space<vmem>>, %arg20: memref<1x512xf32, #tpu.memory_space<vmem>>, %arg21: memref<128x512xbf16, #tpu.memory_space<vmem>>, %arg22: memref<1x512xf32, #tpu.memory_space<vmem>>, %arg23: memref<512x128xbf16, #tpu.memory_space<vmem>>, %arg24: memref<1x128xf32, #tpu.memory_space<vmem>>, %arg25: memref<2x8x128xf32, #tpu.memory_space<vmem>>) attributes {dimension_semantics = [#tpu.dimension_semantics<parallel>], iteration_bounds = array<i64: 1>, scalar_prefetch = 0 : i64, scratch_operands = 0 : i64, tpu.core_type = #tpu.core_type<tc>, window_params = [{transform_indices = @transform_0, window_bounds = array<i64: 2, 8, 128>}, {transform_indices = @transform_1, window_bounds = array<i64: 2, 8, 8>}, {pipeline_mode = #tpu.pipeline_mode<synchronous>, transform_indices = @transform_2, window_bounds = array<i64: 1, 128>}, {pipeline_mode = #tpu.pipeline_mode<synchronous>, transform_indices = @transform_3, window_bounds = array<i64: 1, 128>}, {pipeline_mode = #tpu.pipeline_mode<synchronous>, transform_indices = @transform_4, window_bounds = array<i64: 128, 128>}, {pipeline_mode = #tpu.pipeline_mode<synchronous>, transform_indices = @transform_5, window_bounds = array<i64: 1, 128>}, {pipeline_mode = #tpu.pipeline_mode<synchronous>, transform_indices = @transform_6, window_bounds = array<i64: 128, 128>}, {pipeline_mode = #tpu.pipeline_mode<synchronous>, transform_indices = @transform_7, window_bounds = array<i64: 1, 128>}, {pipeline_mode = #tpu.pipeline_mode<synchronous>, transform_indices = @transform_8, window_bounds = array<i64: 128, 128>}, {pipeline_mode = #tpu.pipeline_mode<synchronous>, transform_indices = @transform_9, window_bounds = array<i64: 1, 128>}, {pipeline_mode = #tpu.pipeline_mode<synchronous>, transform_indices = @transform_10, window_bounds = array<i64: 128, 128>}, {pipeline_mode = #tpu.pipeline_mode<synchronous>, transform_indices = @transform_11, window_bounds = array<i64: 1, 128>}, {pipeline_mode = #tpu.pipeline_mode<synchronous>, transform_indices = @transform_12, window_bounds = array<i64: 1, 128>}, {pipeline_mode = #tpu.pipeline_mode<synchronous>, transform_indices = @transform_13, window_bounds = array<i64: 1, 128>}, {pipeline_mode = #tpu.pipeline_mode<synchronous>, transform_indices = @transform_14, window_bounds = array<i64: 1, 128>}, {pipeline_mode = #tpu.pipeline_mode<synchronous>, transform_indices = @transform_15, window_bounds = array<i64: 1, 128>}, {pipeline_mode = #tpu.pipeline_mode<synchronous>, transform_indices = @transform_16, window_bounds = array<i64: 1, 128>}, {pipeline_mode = #tpu.pipeline_mode<synchronous>, transform_indices = @transform_17, window_bounds = array<i64: 1, 128>}, {pipeline_mode = #tpu.pipeline_mode<synchronous>, transform_indices = @transform_18, window_bounds = array<i64: 128, 512>}, {pipeline_mode = #tpu.pipeline_mode<synchronous>, transform_indices = @transform_19, window_bounds = array<i64: 1, 512>}, {pipeline_mode = #tpu.pipeline_mode<synchronous>, transform_indices = @transform_20, window_bounds = array<i64: 128, 512>}, {pipeline_mode = #tpu.pipeline_mode<synchronous>, transform_indices = @transform_21, window_bounds = array<i64: 1, 512>}, {pipeline_mode = #tpu.pipeline_mode<synchronous>, transform_indices = @transform_22, window_bounds = array<i64: 512, 128>}, {pipeline_mode = #tpu.pipeline_mode<synchronous>, transform_indices = @transform_23, window_bounds = array<i64: 1, 128>}, {transform_indices = @transform_24, window_bounds = array<i64: 2, 8, 128>}]} {
    %c0 = arith.constant 0 : index
    %c0_0 = arith.constant 0 : index
    %c0_1 = arith.constant 0 : index
    %0 = vector.load %arg1[%c0, %c0_0, %c0_1] : memref<2x8x128xf32, #tpu.memory_space<vmem>>, vector<2x8x128xf32>
    %1 = vector.shape_cast %0 : vector<2x8x128xf32> to vector<16x128xf32>
    %c0_2 = arith.constant 0 : index
    %c0_3 = arith.constant 0 : index
    %2 = vector.load %arg3[%c0_2, %c0_3] : memref<1x128xf32, #tpu.memory_space<vmem>>, vector<1x128xf32>
    %c0_4 = arith.constant 0 : index
    %c0_5 = arith.constant 0 : index
    %3 = vector.load %arg4[%c0_4, %c0_5] : memref<1x128xf32, #tpu.memory_space<vmem>>, vector<1x128xf32>
    %cst = arith.constant dense<0.000000e+00> : vector<16xf32>
    %4 = vector.multi_reduction <add>, %1, %cst [1] : vector<16x128xf32> to vector<16xf32>
    %5 = vector.shape_cast %4 : vector<16xf32> to vector<16x1xf32>
    %cst_6 = arith.constant 1.280000e+02 : f32
    %6 = vector.broadcast %cst_6 : f32 to vector<16x1xf32>
    %7 = arith.divf %5, %6 : vector<16x1xf32>
    %8 = arith.mulf %1, %1 : vector<16x128xf32>
    %cst_7 = arith.constant dense<0.000000e+00> : vector<16xf32>
    %9 = vector.multi_reduction <add>, %8, %cst_7 [1] : vector<16x128xf32> to vector<16xf32>
    %10 = vector.shape_cast %9 : vector<16xf32> to vector<16x1xf32>
    %cst_8 = arith.constant 1.280000e+02 : f32
    %11 = vector.broadcast %cst_8 : f32 to vector<16x1xf32>
    %12 = arith.divf %10, %11 : vector<16x1xf32>
    %13 = arith.mulf %7, %7 : vector<16x1xf32>
    %14 = arith.subf %12, %13 : vector<16x1xf32>
    %15 = vector.broadcast %7 : vector<16x1xf32> to vector<16x128xf32>
    %16 = arith.subf %1, %15 : vector<16x128xf32>
    %cst_9 = arith.constant 9.99999974E-6 : f32
    %17 = vector.broadcast %cst_9 : f32 to vector<16x1xf32>
    %18 = arith.addf %14, %17 : vector<16x1xf32>
    %19 = math.rsqrt %18 : vector<16x1xf32>
    %20 = vector.broadcast %19 : vector<16x1xf32> to vector<16x128xf32>
    %21 = arith.mulf %16, %20 : vector<16x128xf32>
    %22 = vector.broadcast %2 : vector<1x128xf32> to vector<16x128xf32>
    %23 = arith.mulf %21, %22 : vector<16x128xf32>
    %24 = vector.broadcast %3 : vector<1x128xf32> to vector<16x128xf32>
    %25 = arith.addf %23, %24 : vector<16x128xf32>
    %26 = arith.truncf %25 : vector<16x128xf32> to vector<16x128xbf16>
    %c0_10 = arith.constant 0 : index
    %c0_11 = arith.constant 0 : index
    %27 = vector.load %arg5[%c0_10, %c0_11] : memref<128x128xbf16, #tpu.memory_space<vmem>>, vector<128x128xbf16>
    %cst_12 = arith.constant dense<0.000000e+00> : vector<16x128xf32>
    %28 = tpu.matmul %26, %27, %cst_12 {dimension_numbers = #tpu.dot_dimension_numbers<[1], [0], [0], [1], [0, 0, 1, 1], [], []>} : vector<16x128xbf16>, vector<128x128xbf16>, vector<16x128xf32> -> vector<16x128xf32>
    %c0_13 = arith.constant 0 : index
    %c0_14 = arith.constant 0 : index
    %29 = vector.load %arg6[%c0_13, %c0_14] : memref<1x128xf32, #tpu.memory_space<vmem>>, vector<1x128xf32>
    %30 = vector.broadcast %29 : vector<1x128xf32> to vector<16x128xf32>
    %31 = arith.addf %28, %30 : vector<16x128xf32>
    %c0_15 = arith.constant 0 : index
    %c0_16 = arith.constant 0 : index
    %32 = vector.load %arg13[%c0_15, %c0_16] : memref<1x128xf32, #tpu.memory_space<vmem>>, vector<1x128xf32>
    %c0_17 = arith.constant 0 : index
    %c0_18 = arith.constant 0 : index
    %33 = vector.load %arg14[%c0_17, %c0_18] : memref<1x128xf32, #tpu.memory_space<vmem>>, vector<1x128xf32>
    %cst_19 = arith.constant dense<0.000000e+00> : vector<16xf32>
    %34 = vector.multi_reduction <add>, %31, %cst_19 [1] : vector<16x128xf32> to vector<16xf32>
    %35 = vector.shape_cast %34 : vector<16xf32> to vector<16x1xf32>
    %cst_20 = arith.constant 1.280000e+02 : f32
    %36 = vector.broadcast %cst_20 : f32 to vector<16x1xf32>
    %37 = arith.divf %35, %36 : vector<16x1xf32>
    %38 = arith.mulf %31, %31 : vector<16x128xf32>
    %cst_21 = arith.constant dense<0.000000e+00> : vector<16xf32>
    %39 = vector.multi_reduction <add>, %38, %cst_21 [1] : vector<16x128xf32> to vector<16xf32>
    %40 = vector.shape_cast %39 : vector<16xf32> to vector<16x1xf32>
    %cst_22 = arith.constant 1.280000e+02 : f32
    %41 = vector.broadcast %cst_22 : f32 to vector<16x1xf32>
    %42 = arith.divf %40, %41 : vector<16x1xf32>
    %43 = arith.mulf %37, %37 : vector<16x1xf32>
    %44 = arith.subf %42, %43 : vector<16x1xf32>
    %45 = vector.broadcast %37 : vector<16x1xf32> to vector<16x128xf32>
    %46 = arith.subf %31, %45 : vector<16x128xf32>
    %cst_23 = arith.constant 9.99999974E-6 : f32
    %47 = vector.broadcast %cst_23 : f32 to vector<16x1xf32>
    %48 = arith.addf %44, %47 : vector<16x1xf32>
    %49 = math.rsqrt %48 : vector<16x1xf32>
    %50 = vector.broadcast %49 : vector<16x1xf32> to vector<16x128xf32>
    %51 = arith.mulf %46, %50 : vector<16x128xf32>
    %52 = vector.broadcast %32 : vector<1x128xf32> to vector<16x128xf32>
    %53 = arith.mulf %51, %52 : vector<16x128xf32>
    %54 = vector.broadcast %33 : vector<1x128xf32> to vector<16x128xf32>
    %55 = arith.addf %53, %54 : vector<16x128xf32>
    %c0_24 = arith.constant 0 : index
    %c0_25 = arith.constant 0 : index
    %56 = vector.load %arg7[%c0_24, %c0_25] : memref<128x128xbf16, #tpu.memory_space<vmem>>, vector<128x128xbf16>
    %cst_26 = arith.constant dense<0.000000e+00> : vector<16x128xf32>
    %57 = tpu.matmul %26, %56, %cst_26 {dimension_numbers = #tpu.dot_dimension_numbers<[1], [0], [0], [1], [0, 0, 1, 1], [], []>} : vector<16x128xbf16>, vector<128x128xbf16>, vector<16x128xf32> -> vector<16x128xf32>
    %c0_27 = arith.constant 0 : index
    %c0_28 = arith.constant 0 : index
    %58 = vector.load %arg8[%c0_27, %c0_28] : memref<1x128xf32, #tpu.memory_space<vmem>>, vector<1x128xf32>
    %59 = vector.broadcast %58 : vector<1x128xf32> to vector<16x128xf32>
    %60 = arith.addf %57, %59 : vector<16x128xf32>
    %c0_29 = arith.constant 0 : index
    %c0_30 = arith.constant 0 : index
    %61 = vector.load %arg15[%c0_29, %c0_30] : memref<1x128xf32, #tpu.memory_space<vmem>>, vector<1x128xf32>
    %c0_31 = arith.constant 0 : index
    %c0_32 = arith.constant 0 : index
    %62 = vector.load %arg16[%c0_31, %c0_32] : memref<1x128xf32, #tpu.memory_space<vmem>>, vector<1x128xf32>
    %cst_33 = arith.constant dense<0.000000e+00> : vector<16xf32>
    %63 = vector.multi_reduction <add>, %60, %cst_33 [1] : vector<16x128xf32> to vector<16xf32>
    %64 = vector.shape_cast %63 : vector<16xf32> to vector<16x1xf32>
    %cst_34 = arith.constant 1.280000e+02 : f32
    %65 = vector.broadcast %cst_34 : f32 to vector<16x1xf32>
    %66 = arith.divf %64, %65 : vector<16x1xf32>
    %67 = arith.mulf %60, %60 : vector<16x128xf32>
    %cst_35 = arith.constant dense<0.000000e+00> : vector<16xf32>
    %68 = vector.multi_reduction <add>, %67, %cst_35 [1] : vector<16x128xf32> to vector<16xf32>
    %69 = vector.shape_cast %68 : vector<16xf32> to vector<16x1xf32>
    %cst_36 = arith.constant 1.280000e+02 : f32
    %70 = vector.broadcast %cst_36 : f32 to vector<16x1xf32>
    %71 = arith.divf %69, %70 : vector<16x1xf32>
    %72 = arith.mulf %66, %66 : vector<16x1xf32>
    %73 = arith.subf %71, %72 : vector<16x1xf32>
    %74 = vector.broadcast %66 : vector<16x1xf32> to vector<16x128xf32>
    %75 = arith.subf %60, %74 : vector<16x128xf32>
    %cst_37 = arith.constant 9.99999974E-6 : f32
    %76 = vector.broadcast %cst_37 : f32 to vector<16x1xf32>
    %77 = arith.addf %73, %76 : vector<16x1xf32>
    %78 = math.rsqrt %77 : vector<16x1xf32>
    %79 = vector.broadcast %78 : vector<16x1xf32> to vector<16x128xf32>
    %80 = arith.mulf %75, %79 : vector<16x128xf32>
    %81 = vector.broadcast %61 : vector<1x128xf32> to vector<16x128xf32>
    %82 = arith.mulf %80, %81 : vector<16x128xf32>
    %83 = vector.broadcast %62 : vector<1x128xf32> to vector<16x128xf32>
    %84 = arith.addf %82, %83 : vector<16x128xf32>
    %c0_38 = arith.constant 0 : index
    %c0_39 = arith.constant 0 : index
    %85 = vector.load %arg9[%c0_38, %c0_39] : memref<128x128xbf16, #tpu.memory_space<vmem>>, vector<128x128xbf16>
    %cst_40 = arith.constant dense<0.000000e+00> : vector<16x128xf32>
    %86 = tpu.matmul %26, %85, %cst_40 {dimension_numbers = #tpu.dot_dimension_numbers<[1], [0], [0], [1], [0, 0, 1, 1], [], []>} : vector<16x128xbf16>, vector<128x128xbf16>, vector<16x128xf32> -> vector<16x128xf32>
    %c0_41 = arith.constant 0 : index
    %c0_42 = arith.constant 0 : index
    %87 = vector.load %arg10[%c0_41, %c0_42] : memref<1x128xf32, #tpu.memory_space<vmem>>, vector<1x128xf32>
    %88 = vector.broadcast %87 : vector<1x128xf32> to vector<16x128xf32>
    %89 = arith.addf %86, %88 : vector<16x128xf32>
    %90 = arith.truncf %55 : vector<16x128xf32> to vector<16x128xbf16>
    %91 = vector.shape_cast %90 : vector<16x128xbf16> to vector<2x8x128xbf16>
    %92 = arith.truncf %84 : vector<16x128xf32> to vector<16x128xbf16>
    %93 = vector.shape_cast %92 : vector<16x128xbf16> to vector<2x8x128xbf16>
    %94 = arith.truncf %89 : vector<16x128xf32> to vector<16x128xbf16>
    %95 = vector.shape_cast %94 : vector<16x128xbf16> to vector<2x8x128xbf16>
    %c0_43 = arith.constant 0 : index
    %c0_44 = arith.constant 0 : index
    %c0_45 = arith.constant 0 : index
    %96 = vector.load %arg2[%c0_43, %c0_44, %c0_45] : memref<2x8x8xf32, #tpu.memory_space<vmem>>, vector<2x8x8xf32>
    %97 = vector.extract_strided_slice %91 {offsets = [0, 0, 0], sizes = [2, 8, 64], strides = [1, 1, 1]} : vector<2x8x128xbf16> to vector<2x8x64xbf16>
    %98 = vector.extract_strided_slice %93 {offsets = [0, 0, 0], sizes = [2, 8, 64], strides = [1, 1, 1]} : vector<2x8x128xbf16> to vector<2x8x64xbf16>
    %99 = vector.extract_strided_slice %95 {offsets = [0, 0, 0], sizes = [2, 8, 64], strides = [1, 1, 1]} : vector<2x8x128xbf16> to vector<2x8x64xbf16>
    "tpu.trace_start"() <{level = 10 : i32, message = "bqe,bke->bqk"}> : () -> ()
    %cst_46 = arith.constant dense<0.000000e+00> : vector<2x8x8xf32>
    %100 = tpu.matmul %97, %98, %cst_46 {dimension_numbers = #tpu.dot_dimension_numbers<[2], [2], [1], [1], [0, 0, 0, 1, 1, 1], [0], [0]>} : vector<2x8x64xbf16>, vector<2x8x64xbf16>, vector<2x8x8xf32> -> vector<2x8x8xf32>
    "tpu.trace_stop"() : () -> ()
    %cst_47 = arith.constant 1.250000e-01 : f32
    %101 = vector.broadcast %cst_47 : f32 to vector<2x8x8xf32>
    %102 = arith.mulf %100, %101 : vector<2x8x8xf32>
    %103 = arith.addf %102, %96 : vector<2x8x8xf32>
    %cst_48 = arith.constant dense<0xFF800000> : vector<2x8xf32>
    %104 = vector.multi_reduction <maximumf>, %103, %cst_48 [2] : vector<2x8x8xf32> to vector<2x8xf32>
    %105 = vector.shape_cast %104 : vector<2x8xf32> to vector<2x8x1xf32>
    %106 = vector.broadcast %105 : vector<2x8x1xf32> to vector<2x8x8xf32>
    %107 = arith.subf %103, %106 : vector<2x8x8xf32>
    %108 = math.exp %107 : vector<2x8x8xf32>
    %cst_49 = arith.constant dense<0.000000e+00> : vector<2x8xf32>
    %109 = vector.multi_reduction <add>, %108, %cst_49 [2] : vector<2x8x8xf32> to vector<2x8xf32>
    %110 = vector.shape_cast %109 : vector<2x8xf32> to vector<2x8x1xf32>
    %111 = tpu.reciprocal %110 {approx = true} : vector<2x8x1xf32> -> vector<2x8x1xf32>
    %112 = vector.broadcast %111 : vector<2x8x1xf32> to vector<2x8x8xf32>
    %113 = arith.mulf %108, %112 : vector<2x8x8xf32>
    %114 = arith.truncf %113 : vector<2x8x8xf32> to vector<2x8x8xbf16>
    "tpu.trace_start"() <{level = 10 : i32, message = "bqk,bke->bqe"}> : () -> ()
    %cst_50 = arith.constant dense<0.000000e+00> : vector<2x8x64xf32>
    %115 = tpu.matmul %114, %99, %cst_50 {dimension_numbers = #tpu.dot_dimension_numbers<[2], [1], [1], [2], [0, 0, 0, 1, 1, 2], [0], [0]>} : vector<2x8x8xbf16>, vector<2x8x64xbf16>, vector<2x8x64xf32> -> vector<2x8x64xf32>
    "tpu.trace_stop"() : () -> ()
    %116 = arith.truncf %115 : vector<2x8x64xf32> to vector<2x8x64xbf16>
    %117 = vector.extract_strided_slice %91 {offsets = [0, 0, 64], sizes = [2, 8, 64], strides = [1, 1, 1]} : vector<2x8x128xbf16> to vector<2x8x64xbf16>
    %118 = vector.extract_strided_slice %93 {offsets = [0, 0, 64], sizes = [2, 8, 64], strides = [1, 1, 1]} : vector<2x8x128xbf16> to vector<2x8x64xbf16>
    %119 = vector.extract_strided_slice %95 {offsets = [0, 0, 64], sizes = [2, 8, 64], strides = [1, 1, 1]} : vector<2x8x128xbf16> to vector<2x8x64xbf16>
    "tpu.trace_start"() <{level = 10 : i32, message = "bqe,bke->bqk"}> : () -> ()
    %cst_51 = arith.constant dense<0.000000e+00> : vector<2x8x8xf32>
    %120 = tpu.matmul %117, %118, %cst_51 {dimension_numbers = #tpu.dot_dimension_numbers<[2], [2], [1], [1], [0, 0, 0, 1, 1, 1], [0], [0]>} : vector<2x8x64xbf16>, vector<2x8x64xbf16>, vector<2x8x8xf32> -> vector<2x8x8xf32>
    "tpu.trace_stop"() : () -> ()
    %cst_52 = arith.constant 1.250000e-01 : f32
    %121 = vector.broadcast %cst_52 : f32 to vector<2x8x8xf32>
    %122 = arith.mulf %120, %121 : vector<2x8x8xf32>
    %123 = arith.addf %122, %96 : vector<2x8x8xf32>
    %cst_53 = arith.constant dense<0xFF800000> : vector<2x8xf32>
    %124 = vector.multi_reduction <maximumf>, %123, %cst_53 [2] : vector<2x8x8xf32> to vector<2x8xf32>
    %125 = vector.shape_cast %124 : vector<2x8xf32> to vector<2x8x1xf32>
    %126 = vector.broadcast %125 : vector<2x8x1xf32> to vector<2x8x8xf32>
    %127 = arith.subf %123, %126 : vector<2x8x8xf32>
    %128 = math.exp %127 : vector<2x8x8xf32>
    %cst_54 = arith.constant dense<0.000000e+00> : vector<2x8xf32>
    %129 = vector.multi_reduction <add>, %128, %cst_54 [2] : vector<2x8x8xf32> to vector<2x8xf32>
    %130 = vector.shape_cast %129 : vector<2x8xf32> to vector<2x8x1xf32>
    %131 = tpu.reciprocal %130 {approx = true} : vector<2x8x1xf32> -> vector<2x8x1xf32>
    %132 = vector.broadcast %131 : vector<2x8x1xf32> to vector<2x8x8xf32>
    %133 = arith.mulf %128, %132 : vector<2x8x8xf32>
    %134 = arith.truncf %133 : vector<2x8x8xf32> to vector<2x8x8xbf16>
    "tpu.trace_start"() <{level = 10 : i32, message = "bqk,bke->bqe"}> : () -> ()
    %cst_55 = arith.constant dense<0.000000e+00> : vector<2x8x64xf32>
    %135 = tpu.matmul %134, %119, %cst_55 {dimension_numbers = #tpu.dot_dimension_numbers<[2], [1], [1], [2], [0, 0, 0, 1, 1, 2], [0], [0]>} : vector<2x8x8xbf16>, vector<2x8x64xbf16>, vector<2x8x64xf32> -> vector<2x8x64xf32>
    "tpu.trace_stop"() : () -> ()
    %136 = arith.truncf %135 : vector<2x8x64xf32> to vector<2x8x64xbf16>
    %137 = tpu.concatenate %116, %136 in 2 : vector<2x8x64xbf16>, vector<2x8x64xbf16> -> vector<2x8x128xbf16>
    %138 = vector.shape_cast %137 : vector<2x8x128xbf16> to vector<16x128xbf16>
    %c0_56 = arith.constant 0 : index
    %c0_57 = arith.constant 0 : index
    %139 = vector.load %arg11[%c0_56, %c0_57] : memref<128x128xbf16, #tpu.memory_space<vmem>>, vector<128x128xbf16>
    %cst_58 = arith.constant dense<0.000000e+00> : vector<16x128xf32>
    %140 = tpu.matmul %138, %139, %cst_58 {dimension_numbers = #tpu.dot_dimension_numbers<[1], [0], [0], [1], [0, 0, 1, 1], [], []>} : vector<16x128xbf16>, vector<128x128xbf16>, vector<16x128xf32> -> vector<16x128xf32>
    %141 = arith.addf %1, %140 : vector<16x128xf32>
    %c0_59 = arith.constant 0 : index
    %c0_60 = arith.constant 0 : index
    %142 = vector.load %arg12[%c0_59, %c0_60] : memref<1x128xf32, #tpu.memory_space<vmem>>, vector<1x128xf32>
    %143 = vector.broadcast %142 : vector<1x128xf32> to vector<16x128xf32>
    %144 = arith.addf %141, %143 : vector<16x128xf32>
    %c0_61 = arith.constant 0 : index
    %c0_62 = arith.constant 0 : index
    %145 = vector.load %arg17[%c0_61, %c0_62] : memref<1x128xf32, #tpu.memory_space<vmem>>, vector<1x128xf32>
    %c0_63 = arith.constant 0 : index
    %c0_64 = arith.constant 0 : index
    %146 = vector.load %arg18[%c0_63, %c0_64] : memref<1x128xf32, #tpu.memory_space<vmem>>, vector<1x128xf32>
    %cst_65 = arith.constant dense<0.000000e+00> : vector<16xf32>
    %147 = vector.multi_reduction <add>, %144, %cst_65 [1] : vector<16x128xf32> to vector<16xf32>
    %148 = vector.shape_cast %147 : vector<16xf32> to vector<16x1xf32>
    %cst_66 = arith.constant 1.280000e+02 : f32
    %149 = vector.broadcast %cst_66 : f32 to vector<16x1xf32>
    %150 = arith.divf %148, %149 : vector<16x1xf32>
    %151 = arith.mulf %144, %144 : vector<16x128xf32>
    %cst_67 = arith.constant dense<0.000000e+00> : vector<16xf32>
    %152 = vector.multi_reduction <add>, %151, %cst_67 [1] : vector<16x128xf32> to vector<16xf32>
    %153 = vector.shape_cast %152 : vector<16xf32> to vector<16x1xf32>
    %cst_68 = arith.constant 1.280000e+02 : f32
    %154 = vector.broadcast %cst_68 : f32 to vector<16x1xf32>
    %155 = arith.divf %153, %154 : vector<16x1xf32>
    %156 = arith.mulf %150, %150 : vector<16x1xf32>
    %157 = arith.subf %155, %156 : vector<16x1xf32>
    %158 = vector.broadcast %150 : vector<16x1xf32> to vector<16x128xf32>
    %159 = arith.subf %144, %158 : vector<16x128xf32>
    %cst_69 = arith.constant 9.99999974E-6 : f32
    %160 = vector.broadcast %cst_69 : f32 to vector<16x1xf32>
    %161 = arith.addf %157, %160 : vector<16x1xf32>
    %162 = math.rsqrt %161 : vector<16x1xf32>
    %163 = vector.broadcast %162 : vector<16x1xf32> to vector<16x128xf32>
    %164 = arith.mulf %159, %163 : vector<16x128xf32>
    %165 = vector.broadcast %145 : vector<1x128xf32> to vector<16x128xf32>
    %166 = arith.mulf %164, %165 : vector<16x128xf32>
    %167 = vector.broadcast %146 : vector<1x128xf32> to vector<16x128xf32>
    %168 = arith.addf %166, %167 : vector<16x128xf32>
    %169 = arith.truncf %168 : vector<16x128xf32> to vector<16x128xbf16>
    %c0_70 = arith.constant 0 : index
    %c0_71 = arith.constant 0 : index
    %170 = vector.load %arg19[%c0_70, %c0_71] : memref<128x512xbf16, #tpu.memory_space<vmem>>, vector<128x512xbf16>
    %cst_72 = arith.constant dense<0.000000e+00> : vector<16x512xf32>
    %171 = tpu.matmul %169, %170, %cst_72 {dimension_numbers = #tpu.dot_dimension_numbers<[1], [0], [0], [1], [0, 0, 1, 1], [], []>} : vector<16x128xbf16>, vector<128x512xbf16>, vector<16x512xf32> -> vector<16x512xf32>
    %c0_73 = arith.constant 0 : index
    %c0_74 = arith.constant 0 : index
    %172 = vector.load %arg20[%c0_73, %c0_74] : memref<1x512xf32, #tpu.memory_space<vmem>>, vector<1x512xf32>
    %173 = vector.broadcast %172 : vector<1x512xf32> to vector<16x512xf32>
    %174 = arith.addf %171, %173 : vector<16x512xf32>
    %c0_75 = arith.constant 0 : index
    %c0_76 = arith.constant 0 : index
    %175 = vector.load %arg21[%c0_75, %c0_76] : memref<128x512xbf16, #tpu.memory_space<vmem>>, vector<128x512xbf16>
    %cst_77 = arith.constant dense<0.000000e+00> : vector<16x512xf32>
    %176 = tpu.matmul %169, %175, %cst_77 {dimension_numbers = #tpu.dot_dimension_numbers<[1], [0], [0], [1], [0, 0, 1, 1], [], []>} : vector<16x128xbf16>, vector<128x512xbf16>, vector<16x512xf32> -> vector<16x512xf32>
    %c0_78 = arith.constant 0 : index
    %c0_79 = arith.constant 0 : index
    %177 = vector.load %arg22[%c0_78, %c0_79] : memref<1x512xf32, #tpu.memory_space<vmem>>, vector<1x512xf32>
    %178 = vector.broadcast %177 : vector<1x512xf32> to vector<16x512xf32>
    %179 = arith.addf %176, %178 : vector<16x512xf32>
    %cst_80 = arith.constant 5.000000e-01 : f32
    %180 = vector.broadcast %cst_80 : f32 to vector<16x512xf32>
    %181 = arith.mulf %180, %179 : vector<16x512xf32>
    %cst_81 = arith.constant 0.707106769 : f32
    %182 = vector.broadcast %cst_81 : f32 to vector<16x512xf32>
    %183 = arith.mulf %179, %182 : vector<16x512xf32>
    %184 = math.erf %183 : vector<16x512xf32>
    %cst_82 = arith.constant 1.000000e+00 : f32
    %185 = vector.broadcast %cst_82 : f32 to vector<16x512xf32>
    %186 = arith.addf %185, %184 : vector<16x512xf32>
    %187 = arith.mulf %181, %186 : vector<16x512xf32>
    %188 = arith.mulf %187, %174 : vector<16x512xf32>
    %189 = arith.truncf %188 : vector<16x512xf32> to vector<16x512xbf16>
    %c0_83 = arith.constant 0 : index
    %c0_84 = arith.constant 0 : index
    %190 = vector.load %arg23[%c0_83, %c0_84] : memref<512x128xbf16, #tpu.memory_space<vmem>>, vector<512x128xbf16>
    %cst_85 = arith.constant dense<0.000000e+00> : vector<16x128xf32>
    %191 = tpu.matmul %189, %190, %cst_85 {dimension_numbers = #tpu.dot_dimension_numbers<[1], [0], [0], [1], [0, 0, 1, 1], [], []>} : vector<16x512xbf16>, vector<512x128xbf16>, vector<16x128xf32> -> vector<16x128xf32>
    %c0_86 = arith.constant 0 : index
    %c0_87 = arith.constant 0 : index
    %192 = vector.load %arg24[%c0_86, %c0_87] : memref<1x128xf32, #tpu.memory_space<vmem>>, vector<1x128xf32>
    %193 = vector.broadcast %192 : vector<1x128xf32> to vector<16x128xf32>
    %194 = arith.addf %191, %193 : vector<16x128xf32>
    %195 = arith.addf %144, %194 : vector<16x128xf32>
    %196 = vector.shape_cast %195 : vector<16x128xf32> to vector<2x8x128xf32>
    %c0_88 = arith.constant 0 : index
    %c0_89 = arith.constant 0 : index
    %c0_90 = arith.constant 0 : index
    %197 = vector.load %arg25[%c0_88, %c0_89, %c0_90] : memref<2x8x128xf32, #tpu.memory_space<vmem>>, vector<2x8x128xf32>
    tpu.vector_store %arg25[%c0_88, %c0_89, %c0_90], %196 {strides = array<i32>} : memref<2x8x128xf32, #tpu.memory_space<vmem>>, vector<2x8x128xf32>,
    return
  }
  func.func @transform_0(%arg0: i32) -> (i32, i32, i32) {
    %c0_i32 = arith.constant 0 : i32
    %c0_i32_0 = arith.constant 0 : i32
    %c0_i32_1 = arith.constant 0 : i32
    return %arg0, %c0_i32, %c0_i32_0 : i32, i32, i32
  }
  func.func @transform_1(%arg0: i32) -> (i32, i32, i32) {
    %c0_i32 = arith.constant 0 : i32
    %c0_i32_0 = arith.constant 0 : i32
    %c0_i32_1 = arith.constant 0 : i32
    return %arg0, %c0_i32, %c0_i32_0 : i32, i32, i32
  }
  func.func @transform_2(%arg0: i32) -> (i32, i32) {
    %c0_i32 = arith.constant 0 : i32
    %c0_i32_0 = arith.constant 0 : i32
    %c0_i32_1 = arith.constant 0 : i32
    return %c0_i32, %c0_i32_0 : i32, i32
  }
  func.func @transform_3(%arg0: i32) -> (i32, i32) {
    %c0_i32 = arith.constant 0 : i32
    %c0_i32_0 = arith.constant 0 : i32
    %c0_i32_1 = arith.constant 0 : i32
    return %c0_i32, %c0_i32_0 : i32, i32
  }
  func.func @transform_4(%arg0: i32) -> (i32, i32) {
    %c0_i32 = arith.constant 0 : i32
    %c0_i32_0 = arith.constant 0 : i32
    %c0_i32_1 = arith.constant 0 : i32
    return %c0_i32, %c0_i32_0 : i32, i32
  }
  func.func @transform_5(%arg0: i32) -> (i32, i32) {
    %c0_i32 = arith.constant 0 : i32
    %c0_i32_0 = arith.constant 0 : i32
    %c0_i32_1 = arith.constant 0 : i32
    return %c0_i32, %c0_i32_0 : i32, i32
  }
  func.func @transform_6(%arg0: i32) -> (i32, i32) {
    %c0_i32 = arith.constant 0 : i32
    %c0_i32_0 = arith.constant 0 : i32
    %c0_i32_1 = arith.constant 0 : i32
    return %c0_i32, %c0_i32_0 : i32, i32
  }
  func.func @transform_7(%arg0: i32) -> (i32, i32) {
    %c0_i32 = arith.constant 0 : i32
    %c0_i32_0 = arith.constant 0 : i32
    %c0_i32_1 = arith.constant 0 : i32
    return %c0_i32, %c0_i32_0 : i32, i32
  }
  func.func @transform_8(%arg0: i32) -> (i32, i32) {
    %c0_i32 = arith.constant 0 : i32
    %c0_i32_0 = arith.constant 0 : i32
    %c0_i32_1 = arith.constant 0 : i32
    return %c0_i32, %c0_i32_0 : i32, i32
  }
  func.func @transform_9(%arg0: i32) -> (i32, i32) {
    %c0_i32 = arith.constant 0 : i32
    %c0_i32_0 = arith.constant 0 : i32
    %c0_i32_1 = arith.constant 0 : i32
    return %c0_i32, %c0_i32_0 : i32, i32
  }
  func.func @transform_10(%arg0: i32) -> (i32, i32) {
    %c0_i32 = arith.constant 0 : i32
    %c0_i32_0 = arith.constant 0 : i32
    %c0_i32_1 = arith.constant 0 : i32
    return %c0_i32, %c0_i32_0 : i32, i32
  }
  func.func @transform_11(%arg0: i32) -> (i32, i32) {
    %c0_i32 = arith.constant 0 : i32
    %c0_i32_0 = arith.constant 0 : i32
    %c0_i32_1 = arith.constant 0 : i32
    return %c0_i32, %c0_i32_0 : i32, i32
  }
  func.func @transform_12(%arg0: i32) -> (i32, i32) {
    %c0_i32 = arith.constant 0 : i32
    %c0_i32_0 = arith.constant 0 : i32
    %c0_i32_1 = arith.constant 0 : i32
    return %c0_i32, %c0_i32_0 : i32, i32
  }
  func.func @transform_13(%arg0: i32) -> (i32, i32) {
    %c0_i32 = arith.constant 0 : i32
    %c0_i32_0 = arith.constant 0 : i32
    %c0_i32_1 = arith.constant 0 : i32
    return %c0_i32, %c0_i32_0 : i32, i32
  }
  func.func @transform_14(%arg0: i32) -> (i32, i32) {
    %c0_i32 = arith.constant 0 : i32
    %c0_i32_0 = arith.constant 0 : i32
    %c0_i32_1 = arith.constant 0 : i32
    return %c0_i32, %c0_i32_0 : i32, i32
  }
  func.func @transform_15(%arg0: i32) -> (i32, i32) {
    %c0_i32 = arith.constant 0 : i32
    %c0_i32_0 = arith.constant 0 : i32
    %c0_i32_1 = arith.constant 0 : i32
    return %c0_i32, %c0_i32_0 : i32, i32
  }
  func.func @transform_16(%arg0: i32) -> (i32, i32) {
    %c0_i32 = arith.constant 0 : i32
    %c0_i32_0 = arith.constant 0 : i32
    %c0_i32_1 = arith.constant 0 : i32
    return %c0_i32, %c0_i32_0 : i32, i32
  }
  func.func @transform_17(%arg0: i32) -> (i32, i32) {
    %c0_i32 = arith.constant 0 : i32
    %c0_i32_0 = arith.constant 0 : i32
    %c0_i32_1 = arith.constant 0 : i32
    return %c0_i32, %c0_i32_0 : i32, i32
  }
  func.func @transform_18(%arg0: i32) -> (i32, i32) {
    %c0_i32 = arith.constant 0 : i32
    %c0_i32_0 = arith.constant 0 : i32
    %c0_i32_1 = arith.constant 0 : i32
    return %c0_i32, %c0_i32_0 : i32, i32
  }
  func.func @transform_19(%arg0: i32) -> (i32, i32) {
    %c0_i32 = arith.constant 0 : i32
    %c0_i32_0 = arith.constant 0 : i32
    %c0_i32_1 = arith.constant 0 : i32
    return %c0_i32, %c0_i32_0 : i32, i32
  }
  func.func @transform_20(%arg0: i32) -> (i32, i32) {
    %c0_i32 = arith.constant 0 : i32
    %c0_i32_0 = arith.constant 0 : i32
    %c0_i32_1 = arith.constant 0 : i32
    return %c0_i32, %c0_i32_0 : i32, i32
  }
  func.func @transform_21(%arg0: i32) -> (i32, i32) {
    %c0_i32 = arith.constant 0 : i32
    %c0_i32_0 = arith.constant 0 : i32
    %c0_i32_1 = arith.constant 0 : i32
    return %c0_i32, %c0_i32_0 : i32, i32
  }
  func.func @transform_22(%arg0: i32) -> (i32, i32) {
    %c0_i32 = arith.constant 0 : i32
    %c0_i32_0 = arith.constant 0 : i32
    %c0_i32_1 = arith.constant 0 : i32
    return %c0_i32, %c0_i32_0 : i32, i32
  }
  func.func @transform_23(%arg0: i32) -> (i32, i32) {
    %c0_i32 = arith.constant 0 : i32
    %c0_i32_0 = arith.constant 0 : i32
    %c0_i32_1 = arith.constant 0 : i32
    return %c0_i32, %c0_i32_0 : i32, i32
  }
  func.func @transform_24(%arg0: i32) -> (i32, i32, i32) {
    %c0_i32 = arith.constant 0 : i32
    %c0_i32_0 = arith.constant 0 : i32
    %c0_i32_1 = arith.constant 0 : i32
    return %arg0, %c0_i32, %c0_i32_0 : i32, i32, i32
  }
}

</mosaic_0001>

<bundles_post_ra>
// kernel: tpu_custom_call.1
= control target key start
LH: loop header
LB: loop body
LE: loop exit
PB: predicated region body
PF: predicated region fallthrough
CT: control target
= control target key end

     0   :  { %s4443_s0 = inlined_call_operand.hbm [shape: f32[2,8,128], index: 0, kind: input, shape index: {}]   ;;  %s4444_s1 = inlined_call_operand.hbm [shape: f32[2,8,8], index: 1, kind: input, shape index: {}]   ;;  %s4445_s2 = inlined_call_operand.hbm [shape: f32[1,128], index: 2, kind: input, shape index: {}]   ;;  %s4446_s3 = inlined_call_operand.hbm [shape: f32[1,128], index: 3, kind: input, shape index: {}]   ;;  %s4447_s4 = inlined_call_operand.hbm [shape: bf16[128,128], index: 4, kind: input, shape index: {}]   ;;  %s4448_s5 = inlined_call_operand.hbm [shape: f32[1,128], index: 5, kind: input, shape index: {}]   ;;  %s4449_s6 = inlined_call_operand.hbm [shape: bf16[128,128], index: 6, kind: input, shape index: {}]   ;;  %s4450_s7 = inlined_call_operand.hbm [shape: f32[1,128], index: 7, kind: input, shape index: {}]   ;;  %s4451_s8 = inlined_call_operand.hbm [shape: bf16[128,128], index: 8, kind: input, shape index: {}]   ;;  %s4452_s9 = inlined_call_operand.hbm [shape: f32[1,128], index: 9, kind: input, shape index: {}]   ;;  %s4453_s10 = inlined_call_operand.hbm [shape: bf16[128,128], index: 10, kind: input, shape index: {}]   ;;  %s4454_s11 = inlined_call_operand.hbm [shape: f32[1,128], index: 11, kind: input, shape index: {}]   ;;  %s4455_s12 = inlined_call_operand.hbm [shape: f32[1,128], index: 12, kind: input, shape index: {}]   ;;  %s4456_s13 = inlined_call_operand.hbm [shape: f32[1,128], index: 13, kind: input, shape index: {}]   ;;  %s4457_s14 = inlined_call_operand.hbm [shape: f32[1,128], index: 14, kind: input, shape index: {}]   ;;  %s4458_s15 = inlined_call_operand.hbm [shape: f32[1,128], index: 15, kind: input, shape index: {}]   ;;  %s4459_s16 = inlined_call_operand.hbm [shape: f32[1,128], index: 16, kind: input, shape index: {}]   ;;  %s4460_s17 = inlined_call_operand.hbm [shape: f32[1,128], index: 17, kind: input, shape index: {}]   ;;  %s4461_s18 = inlined_call_operand.hbm [shape: bf16[128,512], index: 18, kind: input, shape index: {}]   ;;  %s4462_s19 = inlined_call_operand.hbm [shape: f32[1,512], index: 19, kind: input, shape index: {}]   ;;  %s4463_s20 = inlined_call_operand.hbm [shape: bf16[128,512], index: 20, kind: input, shape index: {}]   ;;  %s4464_s21 = inlined_call_operand.hbm [shape: f32[1,512], index: 21, kind: input, shape index: {}]   ;;  %s4465_s22 = inlined_call_operand.hbm [shape: bf16[512,128], index: 22, kind: input, shape index: {}]   ;;  %s4466_s23 = inlined_call_operand.hbm [shape: f32[1,128], index: 23, kind: input, shape index: {}]   ;;  %s4467_s24 = inlined_call_operand.hbm [shape: f32[2,8,128], index: 24, kind: output, shape index: {}]  }
   0x1   :  { %4482 = sst [smem:[#allocation55_spill]] %s4443_s0 }
   0x2   :  { %4483 = sst [smem:[#allocation56_spill]] %s4444_s1 }
   0x3   :  { %4484 = sst [smem:[#allocation57_spill]] %s4445_s2 }
   0x4   :  { %4485 = sst [smem:[#allocation58_spill]] %s4446_s3 }
   0x5   :  { %4486 = sst [smem:[#allocation59_spill]] %s4447_s4 }
   0x6   :  { %4487 = sst [smem:[#allocation60_spill]] %s4448_s5 }
   0x7   :  { %4488 = sst [smem:[#allocation61_spill]] %s4449_s6 }
   0x8   :  { %4489 = sst [smem:[#allocation62_spill]] %s4450_s7 }
   0x9   :  { %4490 = sst [smem:[#allocation63_spill]] %s4451_s8 }
   0xa   :  { %4491 = sst [smem:[#allocation64_spill]] %s4467_s24 }
   0xb   :  { %29 = vsyncpa [#allocation3], 0 }
   0xc   :  { %30 = vsyncpa [#allocation6], 0 }
   0xd   :  { %31 = vsyncpa [#allocation9], 0 }
   0xe   :  { %32 = vsyncpa [#allocation12], 0 }
   0xf   :  { %33 = vsyncpa [#allocation15], 0 }
  0x10   :  { %34 = vsyncpa [#allocation18], 0 }
  0x11   :  { %35 = vsyncpa [#allocation21], 0 }
  0x12   :  { %36 = vsyncpa [#allocation24], 0 }
  0x13   :  { %37 = vsyncpa [#allocation27], 0 }
  0x14   :  { %38 = vsyncpa [#allocation30], 0 }
  0x15   :  { %39 = vsyncpa [#allocation33], 0 }
  0x16   :  { %40 = vsyncpa [#allocation36], 0 }
  0x17   :  { %41 = vsyncpa [#allocation39], 0 }
  0x18   :  { %42 = vsyncpa [#allocation4], 0  ;;  %s3726_s5 = smov [#allocation5]   ;;  %s3727_s27 = smov [#allocation8]  }
  0x19   :  { %s60_s26 = sshll.u32 %s3726_s5, 4  ;;  %s83_s28 = sshll.u32 %s3727_s27, 4  ;;  %s61_s26 = int_to_ptr.vmem [resolvable:$true] %s60_s26  ;;  %s3885_s28 = int_to_ptr.vmem [resolvable:$true] %s83_s28 }
  0x1a   :  { %s4492_s29 = sld [smem:[#allocation56_spill]] }
  0x20   :  { %s3148_s0 = scalar_lea.hbm %s4492_s29, 256 }
  0x21   :  { %p3149_p0 = scmp.ne.s32.totalorder %s4492_s29, %s3148_s0  ;;  %p3152_p1 = scmp.lt.u32.totalorder %s3148_s0, %s4492_s29 }
  0x23   :  { %p3154_p2 = pnand %p3152_p1, %p3149_p0 }
  0x25   :  { %3157 = shalt.err (!%p3154_p2)
}
  0x26   :  { %s3158_s8 = scalar_lea.vmem %s61_s26, 256  ;;  %p3163_p4 = scmp.lt.s32.totalorder %s61_s26, %s61_s26 }
  0x27   :  { %p3159_p3 = scmp.ne.s32.totalorder %s61_s26, %s3158_s8  ;;  %p3164_p5 = scmp.lt.s32.totalorder %s3158_s8, %s3158_s8 }
  0x29   :  { %p3165_p6 = por %p3164_p5, %p3163_p4 }
  0x2b   :  { %p3166_p7 = pnand %p3165_p6, %p3159_p3 }
  0x2d   :  { %3169 = shalt.err (!%p3166_p7)
}
  0x2e   :  { %s4477_s4 = smov 128   ;;  %s4479_s1 = smov 8  }
  0x2f   :  { %66 = dma.hbm_to_vmem [thread:$0]  %s4492_s29, 256, %s61_s26, [#allocation6], %s4477_s4, %s4477_s4, %s4479_s1  }
  0x30   :  { %s4493_s0 = sld [smem:[#allocation58_spill]] }
  0x36   :  { %s3170_s7 = scalar_lea.hbm %s4493_s0, 16 }
  0x37   :  { %p3171_p8 = scmp.ne.s32.totalorder %s4493_s0, %s3170_s7  ;;  %p3174_p9 = scmp.lt.u32.totalorder %s3170_s7, %s4493_s0 }
  0x39   :  { %p3176_p10 = pnand %p3174_p9, %p3171_p8 }
  0x3b   :  { %3179 = shalt.err (!%p3176_p10)
}
  0x3c   :  { %s3180_s5 = scalar_lea.vmem %s3885_s28, 16  ;;  %s3184_s26 = scalar_lea.vmem %s3885_s28, 32 }
  0x3d   :  { %p3181_p11 = scmp.ne.s32.totalorder %s3885_s28, %s3180_s5  ;;  %p3185_p12 = scmp.lt.s32.totalorder %s3885_s28, %s3885_s28 }
  0x3e   :  { %p3186_p13 = scmp.lt.s32.totalorder %s3184_s26, %s3180_s5 }
  0x40   :  { %p3187_p0 = por %p3186_p13, %p3185_p12 }
  0x42   :  { %p3188_p1 = pnand %p3187_p0, %p3181_p11 }
  0x44   :  { %3191 = shalt.err (!%p3188_p1)
}
  0x45   :  { %86 = dma.hbm_to_vmem [thread:$0]  %s4493_s0, 16, %s3885_s28, [#allocation9]  }
  0x46   :  { %s3730_s6 = smov [#allocation11]   ;;  %s3731_s7 = smov [#allocation14]  }
  0x47   :  { %s105_s2 = sshll.u32 %s3730_s6, 4  ;;  %s127_s30 = sshll.u32 %s3731_s7, 4  ;;  %s106_s2 = int_to_ptr.vmem [resolvable:$true] %s105_s2  ;;  %s128_s30 = int_to_ptr.vmem [resolvable:$true] %s127_s30 }
  0x48   :  { %s4494_s8 = sld [smem:[#allocation60_spill]] }
  0x4e   :  { %s3192_s4 = scalar_lea.hbm %s4494_s8, 16 }
  0x4f   :  { %p3193_p2 = scmp.ne.s32.totalorder %s4494_s8, %s3192_s4  ;;  %p3196_p3 = scmp.lt.u32.totalorder %s3192_s4, %s4494_s8 }
  0x51   :  { %p3198_p4 = pnand %p3196_p3, %p3193_p2 }
  0x53   :  { %3201 = shalt.err (!%p3198_p4)
}
  0x54   :  { %s3202_s28 = scalar_lea.vmem %s106_s2, 16  ;;  %s3206_s0 = scalar_lea.vmem %s106_s2, 32 }
  0x55   :  { %p3203_p5 = scmp.ne.s32.totalorder %s106_s2, %s3202_s28  ;;  %p3207_p6 = scmp.lt.s32.totalorder %s106_s2, %s106_s2 }
  0x56   :  { %p3208_p7 = scmp.lt.s32.totalorder %s3206_s0, %s3202_s28 }
  0x58   :  { %p3209_p8 = por %p3208_p7, %p3207_p6 }
  0x5a   :  { %p3210_p9 = pnand %p3209_p8, %p3203_p5 }
  0x5c   :  { %3213 = shalt.err (!%p3210_p9)
}
  0x5d   :  { %108 = dma.hbm_to_vmem [thread:$0]  %s4494_s8, 16, %s106_s2, [#allocation12]  }
  0x5e   :  { %s4495_s7 = sld [smem:[#allocation62_spill]] }
  0x64   :  { %s3214_s3 = scalar_lea.hbm %s4495_s7, 16 }
  0x65   :  { %p3215_p10 = scmp.ne.s32.totalorder %s4495_s7, %s3214_s3  ;;  %p3218_p11 = scmp.lt.u32.totalorder %s3214_s3, %s4495_s7 }
  0x67   :  { %p3220_p12 = pnand %p3218_p11, %p3215_p10 }
  0x69   :  { %3223 = shalt.err (!%p3220_p12)
}
  0x6a   :  { %s3224_s26 = scalar_lea.vmem %s128_s30, 16  ;;  %s3228_s28 = scalar_lea.vmem %s128_s30, 32 }
  0x6b   :  { %p3225_p13 = scmp.ne.s32.totalorder %s128_s30, %s3224_s26  ;;  %p3229_p0 = scmp.lt.s32.totalorder %s128_s30, %s128_s30 }
  0x6c   :  { %p3230_p1 = scmp.lt.s32.totalorder %s3228_s28, %s3224_s26 }
  0x6e   :  { %p3231_p2 = por %p3230_p1, %p3229_p0 }
  0x70   :  { %p3232_p3 = pnand %p3231_p2, %p3225_p13 }
  0x72   :  { %3235 = shalt.err (!%p3232_p3)
}
  0x73   :  { %130 = dma.hbm_to_vmem [thread:$0]  %s4495_s7, 16, %s128_s30, [#allocation15]  }
  0x74   :  { %s3732_s0 = smov [#allocation17]   ;;  %s3733_s27 = smov [#allocation20]  }
  0x75   :  { %s149_s29 = sshll.u32 %s3732_s0, 4  ;;  %s171_s1 = sshll.u32 %s3733_s27, 4  ;;  %s150_s29 = int_to_ptr.vmem [resolvable:$true] %s149_s29  ;;  %s172_s1 = int_to_ptr.vmem [resolvable:$true] %s171_s1 }
  0x76   :  { %s3236_s24 = scalar_lea.hbm %s4452_s9, 16 }
  0x77   :  { %p3237_p4 = scmp.ne.s32.totalorder %s4452_s9, %s3236_s24  ;;  %p3240_p5 = scmp.lt.u32.totalorder %s3236_s24, %s4452_s9 }
  0x79   :  { %p3242_p6 = pnand %p3240_p5, %p3237_p4 }
  0x7b   :  { %3245 = shalt.err (!%p3242_p6)
}
  0x7c   :  { %s3246_s30 = scalar_lea.vmem %s150_s29, 16  ;;  %s3250_s7 = scalar_lea.vmem %s150_s29, 32 }
  0x7d   :  { %p3247_p7 = scmp.ne.s32.totalorder %s150_s29, %s3246_s30  ;;  %p3251_p8 = scmp.lt.s32.totalorder %s150_s29, %s150_s29 }
  0x7e   :  { %p3252_p9 = scmp.lt.s32.totalorder %s3250_s7, %s3246_s30 }
  0x80   :  { %p3253_p10 = por %p3252_p9, %p3251_p8 }
  0x82   :  { %p3254_p11 = pnand %p3253_p10, %p3247_p7 }
  0x84   :  { %3257 = shalt.err (!%p3254_p11)
}
  0x85   :  { %152 = dma.hbm_to_vmem [thread:$0]  %s4452_s9, 16, %s150_s29, [#allocation18]  }
  0x86   :  { %s3258_s27 = scalar_lea.hbm %s4454_s11, 16 }
  0x87   :  { %p3259_p12 = scmp.ne.s32.totalorder %s4454_s11, %s3258_s27  ;;  %p3262_p13 = scmp.lt.u32.totalorder %s3258_s27, %s4454_s11 }
  0x89   :  { %p3264_p0 = pnand %p3262_p13, %p3259_p12 }
  0x8b   :  { %3267 = shalt.err (!%p3264_p0)
}
  0x8c   :  { %s3268_s25 = scalar_lea.vmem %s172_s1, 16  ;;  %s3272_s5 = scalar_lea.vmem %s172_s1, 32 }
  0x8d   :  { %p3269_p1 = scmp.ne.s32.totalorder %s172_s1, %s3268_s25  ;;  %p3273_p2 = scmp.lt.s32.totalorder %s172_s1, %s172_s1 }
  0x8e   :  { %p3274_p3 = scmp.lt.s32.totalorder %s3272_s5, %s3268_s25 }
  0x90   :  { %p3275_p4 = por %p3274_p3, %p3273_p2 }
  0x92   :  { %p3276_p5 = pnand %p3275_p4, %p3269_p1 }
  0x94   :  { %3279 = shalt.err (!%p3276_p5)
}
  0x95   :  { %174 = dma.hbm_to_vmem [thread:$0]  %s4454_s11, 16, %s172_s1, [#allocation21]  }
  0x96   :  { %s3734_s26 = smov [#allocation23]   ;;  %s3735_s7 = smov [#allocation26]  }
  0x97   :  { %s191_s30 = sshll.u32 %s3734_s26, 4  ;;  %s211_s28 = sshll.u32 %s3735_s7, 4  ;;  %s192_s30 = int_to_ptr.vmem [resolvable:$true] %s191_s30  ;;  %s212_s28 = int_to_ptr.vmem [resolvable:$true] %s211_s28 }
  0x98   :  { %s3280_s0 = scalar_lea.hbm %s4456_s13, 16 }
  0x99   :  { %p3281_p6 = scmp.ne.s32.totalorder %s4456_s13, %s3280_s0  ;;  %p3284_p7 = scmp.lt.u32.totalorder %s3280_s0, %s4456_s13 }
  0x9b   :  { %p3286_p8 = pnand %p3284_p7, %p3281_p6 }
  0x9d   :  { %3289 = shalt.err (!%p3286_p8)
}
  0x9e   :  { %s3290_s11 = scalar_lea.vmem %s192_s30, 16  ;;  %s3294_s1 = scalar_lea.vmem %s192_s30, 32 }
  0x9f   :  { %p3291_p9 = scmp.ne.s32.totalorder %s192_s30, %s3290_s11  ;;  %p3295_p10 = scmp.lt.s32.totalorder %s192_s30, %s192_s30 }
  0xa0   :  { %p3296_p11 = scmp.lt.s32.totalorder %s3294_s1, %s3290_s11 }
  0xa2   :  { %p3297_p12 = por %p3296_p11, %p3295_p10 }
  0xa4   :  { %p3298_p13 = pnand %p3297_p12, %p3291_p9 }
  0xa6   :  { %3301 = shalt.err (!%p3298_p13)
}
  0xa7   :  { %194 = dma.hbm_to_vmem [thread:$0]  %s4456_s13, 16, %s192_s30, [#allocation24]  }
  0xa8   :  { %s3302_s29 = scalar_lea.hbm %s4458_s15, 16 }
  0xa9   :  { %p3303_p0 = scmp.ne.s32.totalorder %s4458_s15, %s3302_s29  ;;  %p3306_p1 = scmp.lt.u32.totalorder %s3302_s29, %s4458_s15 }
  0xab   :  { %p3308_p2 = pnand %p3306_p1, %p3303_p0 }
  0xad   :  { %3311 = shalt.err (!%p3308_p2)
}
  0xae   :  { %s3312_s0 = scalar_lea.vmem %s212_s28, 16  ;;  %s3316_s27 = scalar_lea.vmem %s212_s28, 32 }
  0xaf   :  { %p3313_p3 = scmp.ne.s32.totalorder %s212_s28, %s3312_s0  ;;  %p3317_p4 = scmp.lt.s32.totalorder %s212_s28, %s212_s28 }
  0xb0   :  { %p3318_p5 = scmp.lt.s32.totalorder %s3316_s27, %s3312_s0 }
  0xb2   :  { %p3319_p6 = por %p3318_p5, %p3317_p4 }
  0xb4   :  { %p3320_p7 = pnand %p3319_p6, %p3313_p3 }
  0xb6   :  { %3323 = shalt.err (!%p3320_p7)
}
  0xb7   :  { %214 = dma.hbm_to_vmem [thread:$0]  %s4458_s15, 16, %s212_s28, [#allocation27]  }
  0xb8   :  { %s3736_s6 = smov [#allocation29]   ;;  %s3737_s24 = smov [#allocation32]  }
  0xb9   :  { %s231_s3 = sshll.u32 %s3736_s6, 4  ;;  %s253_s11 = sshll.u32 %s3737_s24, 4  ;;  %s232_s3 = int_to_ptr.vmem [resolvable:$true] %s231_s3  ;;  %s254_s11 = int_to_ptr.vmem [resolvable:$true] %s253_s11 }
  0xba   :  { %s3324_s25 = scalar_lea.hbm %s4460_s17, 16 }
  0xbb   :  { %p3325_p8 = scmp.ne.s32.totalorder %s4460_s17, %s3324_s25  ;;  %p3328_p9 = scmp.lt.u32.totalorder %s3324_s25, %s4460_s17 }
  0xbd   :  { %p3330_p10 = pnand %p3328_p9, %p3325_p8 }
  0xbf   :  { %3333 = shalt.err (!%p3330_p10)
}
  0xc0   :  { %s3334_s15 = scalar_lea.vmem %s232_s3, 16  ;;  %s3338_s28 = scalar_lea.vmem %s232_s3, 32 }
  0xc1   :  { %p3335_p11 = scmp.ne.s32.totalorder %s232_s3, %s3334_s15  ;;  %p3339_p12 = scmp.lt.s32.totalorder %s232_s3, %s232_s3 }
  0xc2   :  { %p3340_p13 = scmp.lt.s32.totalorder %s3338_s28, %s3334_s15 }
  0xc4   :  { %p3341_p0 = por %p3340_p13, %p3339_p12 }
  0xc6   :  { %p3342_p1 = pnand %p3341_p0, %p3335_p11 }
  0xc8   :  { %3345 = shalt.err (!%p3342_p1)
}
  0xc9   :  { %234 = dma.hbm_to_vmem [thread:$0]  %s4460_s17, 16, %s232_s3, [#allocation30]  }
  0xca   :  { %s3346_s27 = scalar_lea.hbm %s4462_s19, 64 }
  0xcb   :  { %p3347_p2 = scmp.ne.s32.totalorder %s4462_s19, %s3346_s27  ;;  %p3350_p3 = scmp.lt.u32.totalorder %s3346_s27, %s4462_s19 }
  0xcd   :  { %p3352_p4 = pnand %p3350_p3, %p3347_p2 }
  0xcf   :  { %3355 = shalt.err (!%p3352_p4)
}
  0xd0   :  { %s3356_s1 = scalar_lea.vmem %s254_s11, 64  ;;  %p3361_p6 = scmp.lt.s32.totalorder %s254_s11, %s254_s11 }
  0xd1   :  { %p3357_p5 = scmp.ne.s32.totalorder %s254_s11, %s3356_s1  ;;  %p3362_p7 = scmp.lt.s32.totalorder %s3356_s1, %s3356_s1 }
  0xd3   :  { %p3363_p8 = por %p3362_p7, %p3361_p6 }
  0xd5   :  { %p3364_p9 = pnand %p3363_p8, %p3357_p5 }
  0xd7   :  { %3367 = shalt.err (!%p3364_p9)
}
  0xd8   :  { %256 = dma.hbm_to_vmem [thread:$0]  %s4462_s19, 64, %s254_s11, [#allocation33]  }
  0xd9   :  { %s3738_s4 = smov [#allocation35]   ;;  %s3739_s5 = smov [#allocation2]  }
  0xda   :  { %s275_s25 = sshll.u32 %s3738_s4, 4  ;;  %s48_s9 = sshll.u32 %s3739_s5, 4  ;;  %s276_s25 = int_to_ptr.vmem [resolvable:$true] %s275_s25  ;;  %s4016_s9 = int_to_ptr.vmem [resolvable:$true] %s48_s9 }
  0xdb   :  { %s3368_s15 = scalar_lea.hbm %s4464_s21, 64 }
  0xdc   :  { %p3369_p10 = scmp.ne.s32.totalorder %s4464_s21, %s3368_s15  ;;  %p3372_p11 = scmp.lt.u32.totalorder %s3368_s15, %s4464_s21 }
  0xde   :  { %p3374_p12 = pnand %p3372_p11, %p3369_p10 }
  0xe0   :  { %3377 = shalt.err (!%p3374_p12)
}
  0xe1   :  { %s3378_s19 = scalar_lea.vmem %s276_s25, 64  ;;  %p3383_p0 = scmp.lt.s32.totalorder %s276_s25, %s276_s25 }
  0xe2   :  { %p3379_p13 = scmp.ne.s32.totalorder %s276_s25, %s3378_s19  ;;  %p3384_p1 = scmp.lt.s32.totalorder %s3378_s19, %s3378_s19 }
  0xe4   :  { %p3385_p2 = por %p3384_p1, %p3383_p0 }
  0xe6   :  { %p3386_p3 = pnand %p3385_p2, %p3379_p13 }
  0xe8   :  { %3389 = shalt.err (!%p3386_p3)
}
  0xe9   :  { %278 = dma.hbm_to_vmem [thread:$0]  %s4464_s21, 64, %s276_s25, [#allocation36]  }
  0xea   :  { %s4496_s30 = sld [smem:[#allocation55_spill]] }
  0xf0   :  { %s3390_s6 = scalar_lea.hbm %s4496_s30, 256 }
  0xf1   :  { %p3391_p4 = scmp.ne.s32.totalorder %s4496_s30, %s3390_s6  ;;  %p3394_p5 = scmp.lt.u32.totalorder %s3390_s6, %s4496_s30 }
  0xf3   :  { %p3396_p6 = pnand %p3394_p5, %p3391_p4 }
  0xf5   :  { %3399 = shalt.err (!%p3396_p6)
}
  0xf6   :  { %s3400_s4 = scalar_lea.vmem %s4016_s9, 256  ;;  %p3405_p8 = scmp.lt.s32.totalorder %s4016_s9, %s4016_s9 }
  0xf7   :  { %p3401_p7 = scmp.ne.s32.totalorder %s4016_s9, %s3400_s4  ;;  %p3406_p9 = scmp.lt.s32.totalorder %s3400_s4, %s3400_s4 }
  0xf9   :  { %p3407_p10 = por %p3406_p9, %p3405_p8 }
  0xfb   :  { %p3408_p11 = pnand %p3407_p10, %p3401_p7 }
  0xfd   :  { %3411 = shalt.err (!%p3408_p11)
}
  0xfe   :  { %s4497_s21 = smov 8   ;;  %s4498_s25 = smov 128  }
  0xff   :  { %54 = dma.hbm_to_vmem [thread:$0]  %s4496_s30, 256, %s4016_s9, [#allocation3], %s4498_s25, %s4498_s25, %s4497_s21  }
 0x100   :  { %s3740_s26 = smov [#allocation7]   ;;  %s3741_s28 = smov [#allocation10]  }
 0x101   :  { %s73_s15 = sshll.u32 %s3740_s26, 4  ;;  %s92_s7 = sshll.u32 %s3741_s28, 4  ;;  %s74_s15 = int_to_ptr.vmem [resolvable:$true] %s73_s15  ;;  %s4050_s7 = int_to_ptr.vmem [resolvable:$true] %s92_s7 }
 0x102   :  { %s4499_s19 = sld [smem:[#allocation57_spill]] }
 0x108   :  { %s3412_s11 = scalar_lea.hbm %s4499_s19, 16 }
 0x109   :  { %p3413_p12 = scmp.ne.s32.totalorder %s4499_s19, %s3412_s11  ;;  %p3416_p13 = scmp.lt.u32.totalorder %s3412_s11, %s4499_s19 }
 0x10b   :  { %p3418_p0 = pnand %p3416_p13, %p3413_p12 }
 0x10d   :  { %3421 = shalt.err (!%p3418_p0)
}
 0x10e   :  { %s3422_s9 = scalar_lea.vmem %s74_s15, 16  ;;  %s3426_s30 = scalar_lea.vmem %s74_s15, 32 }
 0x10f   :  { %p3423_p1 = scmp.ne.s32.totalorder %s74_s15, %s3422_s9  ;;  %p3427_p2 = scmp.lt.s32.totalorder %s74_s15, %s74_s15 }
 0x110   :  { %p3428_p3 = scmp.lt.s32.totalorder %s3426_s30, %s3422_s9 }
 0x112   :  { %p3429_p4 = por %p3428_p3, %p3427_p2 }
 0x114   :  { %p3430_p5 = pnand %p3429_p4, %p3423_p1 }
 0x116   :  { %3433 = shalt.err (!%p3430_p5)
}
 0x117   :  { %76 = dma.hbm_to_vmem [thread:$0]  %s4499_s19, 16, %s74_s15, [#allocation6]  }
 0x118   :  { %s4500_s4 = sld [smem:[#allocation59_spill]] }
 0x11e   :  { %s3434_s5 = scalar_lea.hbm %s4500_s4, 1024 }
 0x11f   :  { %p3435_p6 = scmp.ne.s32.totalorder %s4500_s4, %s3434_s5  ;;  %p3438_p7 = scmp.lt.u32.totalorder %s3434_s5, %s4500_s4 }
 0x121   :  { %p3440_p8 = pnand %p3438_p7, %p3435_p6 }
 0x123   :  { %3443 = shalt.err (!%p3440_p8)
}
 0x124   :  { %s3444_s8 = scalar_lea.vmem %s4050_s7, 1024  ;;  %p3449_p10 = scmp.lt.s32.totalorder %s4050_s7, %s4050_s7 }
 0x125   :  { %p3445_p9 = scmp.ne.s32.totalorder %s4050_s7, %s3444_s8  ;;  %p3450_p11 = scmp.lt.s32.totalorder %s3444_s8, %s3444_s8 }
 0x127   :  { %p3451_p12 = por %p3450_p11, %p3449_p10 }
 0x129   :  { %p3452_p13 = pnand %p3451_p12, %p3445_p9 }
 0x12b   :  { %3455 = shalt.err (!%p3452_p13)
}
 0x12c   :  { %s3742_s15 = smov 64   ;;  %s3743_s19 = smov 4  }
 0x12d   :  { %98 = dma.hbm_to_vmem [thread:$0]  %s4500_s4, 1024, %s4050_s7, [#allocation9], %s3742_s15, %s3742_s15, %s3743_s19  }
 0x12e   :  { %s3744_s27 = smov [#allocation13]   ;;  %s3745_s6 = smov [#allocation16]  }
 0x12f   :  { %s114_s13 = sshll.u32 %s3744_s27, 4  ;;  %s136_s9 = sshll.u32 %s3745_s6, 4  ;;  %s115_s13 = int_to_ptr.vmem [resolvable:$true] %s114_s13  ;;  %s4084_s9 = int_to_ptr.vmem [resolvable:$true] %s136_s9 }
 0x130   :  { %s4501_s1 = sld [smem:[#allocation61_spill]] }
 0x136   :  { %s3456_s17 = scalar_lea.hbm %s4501_s1, 1024 }
 0x137   :  { %p3457_p0 = scmp.ne.s32.totalorder %s4501_s1, %s3456_s17  ;;  %p3460_p1 = scmp.lt.u32.totalorder %s3456_s17, %s4501_s1 }
 0x139   :  { %p3462_p2 = pnand %p3460_p1, %p3457_p0 }
 0x13b   :  { %3465 = shalt.err (!%p3462_p2)
}
 0x13c   :  { %s3466_s7 = scalar_lea.vmem %s115_s13, 1024  ;;  %p3471_p4 = scmp.lt.s32.totalorder %s115_s13, %s115_s13 }
 0x13d   :  { %p3467_p3 = scmp.ne.s32.totalorder %s115_s13, %s3466_s7  ;;  %p3472_p5 = scmp.lt.s32.totalorder %s3466_s7, %s3466_s7 }
 0x13f   :  { %p3473_p6 = por %p3472_p5, %p3471_p4 }
 0x141   :  { %p3474_p7 = pnand %p3473_p6, %p3467_p3 }
 0x143   :  { %3477 = shalt.err (!%p3474_p7)
}
 0x144   :  { %120 = dma.hbm_to_vmem [thread:$0]  %s4501_s1, 1024, %s115_s13, [#allocation12], %s3742_s15, %s3742_s15, %s3743_s19  }
 0x145   :  { %s4502_s11 = sld [smem:[#allocation63_spill]] }
 0x14b   :  { %s3478_s0 = scalar_lea.hbm %s4502_s11, 1024 }
 0x14c   :  { %p3479_p8 = scmp.ne.s32.totalorder %s4502_s11, %s3478_s0  ;;  %p3482_p9 = scmp.lt.u32.totalorder %s3478_s0, %s4502_s11 }
 0x14e   :  { %p3484_p10 = pnand %p3482_p9, %p3479_p8 }
 0x150   :  { %3487 = shalt.err (!%p3484_p10)
}
 0x151   :  { %s3488_s17 = scalar_lea.vmem %s4084_s9, 1024  ;;  %p3493_p12 = scmp.lt.s32.totalorder %s4084_s9, %s4084_s9 }
 0x152   :  { %p3489_p11 = scmp.ne.s32.totalorder %s4084_s9, %s3488_s17  ;;  %p3494_p13 = scmp.lt.s32.totalorder %s3488_s17, %s3488_s17 }
 0x154   :  { %p3495_p0 = por %p3494_p13, %p3493_p12 }
 0x156   :  { %p3496_p1 = pnand %p3495_p0, %p3489_p11 }
 0x158   :  { %3499 = shalt.err (!%p3496_p1)
}
 0x159   :  { %142 = dma.hbm_to_vmem [thread:$0]  %s4502_s11, 1024, %s4084_s9, [#allocation15], %s3742_s15, %s3742_s15, %s3743_s19  }
 0x15a   :  { %s3746_s3 = smov [#allocation19]   ;;  %s3747_s29 = smov [#allocation22]  }
 0x15b   :  { %s158_s5 = sshll.u32 %s3746_s3, 4  ;;  %s181_s26 = sshll.u32 %s3747_s29, 4  ;;  %s159_s5 = int_to_ptr.vmem [resolvable:$true] %s158_s5  ;;  %s182_s26 = int_to_ptr.vmem [resolvable:$true] %s181_s26 }
 0x15c   :  { %s3500_s28 = scalar_lea.hbm %s4453_s10, 1024 }
 0x15d   :  { %p3501_p2 = scmp.ne.s32.totalorder %s4453_s10, %s3500_s28  ;;  %p3504_p3 = scmp.lt.u32.totalorder %s3500_s28, %s4453_s10 }
 0x15f   :  { %p3506_p4 = pnand %p3504_p3, %p3501_p2 }
 0x161   :  { %3509 = shalt.err (!%p3506_p4)
}
 0x162   :  { %s3510_s9 = scalar_lea.vmem %s159_s5, 1024  ;;  %p3515_p6 = scmp.lt.s32.totalorder %s159_s5, %s159_s5 }
 0x163   :  { %p3511_p5 = scmp.ne.s32.totalorder %s159_s5, %s3510_s9  ;;  %p3516_p7 = scmp.lt.s32.totalorder %s3510_s9, %s3510_s9 }
 0x165   :  { %p3517_p8 = por %p3516_p7, %p3515_p6 }
 0x167   :  { %p3518_p9 = pnand %p3517_p8, %p3511_p5 }
 0x169   :  { %3521 = shalt.err (!%p3518_p9)
}
 0x16a   :  { %164 = dma.hbm_to_vmem [thread:$0]  %s4453_s10, 1024, %s159_s5, [#allocation18], %s3742_s15, %s3742_s15, %s3743_s19  }
 0x16b   :  { %s3522_s17 = scalar_lea.hbm %s4455_s12, 16 }
 0x16c   :  { %p3523_p10 = scmp.ne.s32.totalorder %s4455_s12, %s3522_s17  ;;  %p3526_p11 = scmp.lt.u32.totalorder %s3522_s17, %s4455_s12 }
 0x16e   :  { %p3528_p12 = pnand %p3526_p11, %p3523_p10 }
 0x170   :  { %3531 = shalt.err (!%p3528_p12)
}
 0x171   :  { %s3532_s7 = scalar_lea.vmem %s182_s26, 16  ;;  %s3536_s4 = scalar_lea.vmem %s182_s26, 32 }
 0x172   :  { %p3533_p13 = scmp.ne.s32.totalorder %s182_s26, %s3532_s7  ;;  %p3537_p0 = scmp.lt.s32.totalorder %s182_s26, %s182_s26 }
 0x173   :  { %p3538_p1 = scmp.lt.s32.totalorder %s3536_s4, %s3532_s7 }
 0x175   :  { %p3539_p2 = por %p3538_p1, %p3537_p0 }
 0x177   :  { %p3540_p3 = pnand %p3539_p2, %p3533_p13 }
 0x179   :  { %3543 = shalt.err (!%p3540_p3)
}
 0x17a   :  { %184 = dma.hbm_to_vmem [thread:$0]  %s4455_s12, 16, %s182_s26, [#allocation21]  }
 0x17b   :  { %s3748_s28 = smov [#allocation25]   ;;  %s3749_s8 = smov [#allocation28]  }
 0x17c   :  { %s201_s2 = sshll.u32 %s3748_s28, 4  ;;  %s221_s0 = sshll.u32 %s3749_s8, 4  ;;  %s202_s2 = int_to_ptr.vmem [resolvable:$true] %s201_s2  ;;  %s222_s0 = int_to_ptr.vmem [resolvable:$true] %s221_s0 }
 0x17d   :  { %s3544_s11 = scalar_lea.hbm %s4457_s14, 16 }
 0x17e   :  { %p3545_p4 = scmp.ne.s32.totalorder %s4457_s14, %s3544_s11  ;;  %p3548_p5 = scmp.lt.u32.totalorder %s3544_s11, %s4457_s14 }
 0x180   :  { %p3550_p6 = pnand %p3548_p5, %p3545_p4 }
 0x182   :  { %3553 = shalt.err (!%p3550_p6)
}
 0x183   :  { %s3554_s12 = scalar_lea.vmem %s202_s2, 16  ;;  %s3558_s26 = scalar_lea.vmem %s202_s2, 32 }
 0x184   :  { %p3555_p7 = scmp.ne.s32.totalorder %s202_s2, %s3554_s12  ;;  %p3559_p8 = scmp.lt.s32.totalorder %s202_s2, %s202_s2 }
 0x185   :  { %p3560_p9 = scmp.lt.s32.totalorder %s3558_s26, %s3554_s12 }
 0x187   :  { %p3561_p10 = por %p3560_p9, %p3559_p8 }
 0x189   :  { %p3562_p11 = pnand %p3561_p10, %p3555_p7 }
 0x18b   :  { %3565 = shalt.err (!%p3562_p11)
}
 0x18c   :  { %204 = dma.hbm_to_vmem [thread:$0]  %s4457_s14, 16, %s202_s2, [#allocation24]  }
 0x18d   :  { %s3566_s7 = scalar_lea.hbm %s4459_s16, 16 }
 0x18e   :  { %p3567_p12 = scmp.ne.s32.totalorder %s4459_s16, %s3566_s7  ;;  %p3570_p13 = scmp.lt.u32.totalorder %s3566_s7, %s4459_s16 }
 0x190   :  { %p3572_p0 = pnand %p3570_p13, %p3567_p12 }
 0x192   :  { %3575 = shalt.err (!%p3572_p0)
}
 0x193   :  { %s3576_s8 = scalar_lea.vmem %s222_s0, 16  ;;  %s3580_s27 = scalar_lea.vmem %s222_s0, 32 }
 0x194   :  { %p3577_p1 = scmp.ne.s32.totalorder %s222_s0, %s3576_s8  ;;  %p3581_p2 = scmp.lt.s32.totalorder %s222_s0, %s222_s0 }
 0x195   :  { %p3582_p3 = scmp.lt.s32.totalorder %s3580_s27, %s3576_s8 }
 0x197   :  { %p3583_p4 = por %p3582_p3, %p3581_p2 }
 0x199   :  { %p3584_p5 = pnand %p3583_p4, %p3577_p1 }
 0x19b   :  { %3587 = shalt.err (!%p3584_p5)
}
 0x19c   :  { %224 = dma.hbm_to_vmem [thread:$0]  %s4459_s16, 16, %s222_s0, [#allocation27]  }
 0x19d   :  { %s3750_s9 = smov [#allocation31]   ;;  %s3588_s24 = scalar_lea.hbm %s4461_s18, 4096 }
 0x19e   :  { %s240_s11 = sshll.u32 %s3750_s9, 4  ;;  %p3589_p6 = scmp.ne.s32.totalorder %s4461_s18, %s3588_s24  ;;  %s241_s11 = int_to_ptr.vmem [resolvable:$true] %s240_s11 }
 0x19f   :  { %p3592_p7 = scmp.lt.u32.totalorder %s3588_s24, %s4461_s18 }
 0x1a1   :  { %p3594_p8 = pnand %p3592_p7, %p3589_p6 }
 0x1a3   :  { %3597 = shalt.err (!%p3594_p8)
}
 0x1a4   :  { %s3598_s1 = scalar_lea.vmem %s241_s11, 4096  ;;  %p3603_p10 = scmp.lt.s32.totalorder %s241_s11, %s241_s11 }
 0x1a5   :  { %p3599_p9 = scmp.ne.s32.totalorder %s241_s11, %s3598_s1  ;;  %p3604_p11 = scmp.lt.s32.totalorder %s3598_s1, %s3598_s1 }
 0x1a7   :  { %p3605_p12 = por %p3604_p11, %p3603_p10 }
 0x1a9   :  { %p3606_p13 = pnand %p3605_p12, %p3599_p9 }
 0x1ab   :  { %3609 = shalt.err (!%p3606_p13)
}
 0x1ac   :  { %s3751_s16 = smov 256   ;;  %s3752_s0 = smov 16  }
 0x1ad   :  { %246 = dma.hbm_to_vmem [thread:$0]  %s4461_s18, 4096, %s241_s11, [#allocation30], %s3751_s16, %s3751_s16, %s3752_s0  }
 0x1ae   :  { %s3753_s7 = smov [#allocation34]   ;;  %s3754_s10 = smov [#allocation37]  }
 0x1af   :  { %s262_s4 = sshll.u32 %s3753_s7, 4  ;;  %s284_s5 = sshll.u32 %s3754_s10, 4  ;;  %s263_s4 = int_to_ptr.vmem [resolvable:$true] %s262_s4  ;;  %s285_s5 = int_to_ptr.vmem [resolvable:$true] %s284_s5 }
 0x1b0   :  { %s3610_s27 = scalar_lea.hbm %s4463_s20, 4096 }
 0x1b1   :  { %p3611_p0 = scmp.ne.s32.totalorder %s4463_s20, %s3610_s27  ;;  %p3614_p1 = scmp.lt.u32.totalorder %s3610_s27, %s4463_s20 }
 0x1b3   :  { %p3616_p2 = pnand %p3614_p1, %p3611_p0 }
 0x1b5   :  { %3619 = shalt.err (!%p3616_p2)
}
 0x1b6   :  { %s3620_s18 = scalar_lea.vmem %s263_s4, 4096  ;;  %p3625_p4 = scmp.lt.s32.totalorder %s263_s4, %s263_s4 }
 0x1b7   :  { %p3621_p3 = scmp.ne.s32.totalorder %s263_s4, %s3620_s18  ;;  %p3626_p5 = scmp.lt.s32.totalorder %s3620_s18, %s3620_s18 }
 0x1b9   :  { %p3627_p6 = por %p3626_p5, %p3625_p4 }
 0x1bb   :  { %p3628_p7 = pnand %p3627_p6, %p3621_p3 }
 0x1bd   :  { %3631 = shalt.err (!%p3628_p7)
}
 0x1be   :  { %268 = dma.hbm_to_vmem [thread:$0]  %s4463_s20, 4096, %s263_s4, [#allocation33], %s3751_s16, %s3751_s16, %s3752_s0  }
 0x1bf   :  { %s3632_s12 = scalar_lea.hbm %s4465_s22, 4096 }
 0x1c0   :  { %p3633_p8 = scmp.ne.s32.totalorder %s4465_s22, %s3632_s12  ;;  %p3636_p9 = scmp.lt.u32.totalorder %s3632_s12, %s4465_s22 }
 0x1c2   :  { %p3638_p10 = pnand %p3636_p9, %p3633_p8 }
 0x1c4   :  { %3641 = shalt.err (!%p3638_p10)
}
 0x1c5   :  { %s3642_s29 = scalar_lea.vmem %s285_s5, 4096  ;;  %p3647_p12 = scmp.lt.s32.totalorder %s285_s5, %s285_s5 }
 0x1c6   :  { %p3643_p11 = scmp.ne.s32.totalorder %s285_s5, %s3642_s29  ;;  %p3648_p13 = scmp.lt.s32.totalorder %s3642_s29, %s3642_s29 }
 0x1c8   :  { %p3649_p0 = por %p3648_p13, %p3647_p12 }
 0x1ca   :  { %p3650_p1 = pnand %p3649_p0, %p3643_p11 }
 0x1cc   :  { %3653 = shalt.err (!%p3650_p1)
}
 0x1cd   :  { %290 = dma.hbm_to_vmem [thread:$0]  %s4465_s22, 4096, %s285_s5, [#allocation36], %s3742_s15, %s3742_s15, %s3743_s19  }
 0x1ce   :  { %s3755_s0 = smov [#allocation38]   ;;  %s3654_s28 = scalar_lea.hbm %s4466_s23, 16 }
 0x1cf   :  { %s297_s7 = sshll.u32 %s3755_s0, 4  ;;  %p3655_p2 = scmp.ne.s32.totalorder %s4466_s23, %s3654_s28  ;;  %s298_s7 = int_to_ptr.vmem [resolvable:$true] %s297_s7 }
 0x1d0   :  { %p3658_p3 = scmp.lt.u32.totalorder %s3654_s28, %s4466_s23 }
 0x1d2   :  { %p3660_p4 = pnand %p3658_p3, %p3655_p2 }
 0x1d4   :  { %3663 = shalt.err (!%p3660_p4)
}
 0x1d5   :  { %s3664_s9 = scalar_lea.vmem %s298_s7, 16  ;;  %s3668_s22 = scalar_lea.vmem %s298_s7, 32 }
 0x1d6   :  { %p3665_p5 = scmp.ne.s32.totalorder %s298_s7, %s3664_s9  ;;  %p3669_p6 = scmp.lt.s32.totalorder %s298_s7, %s298_s7 }
 0x1d7   :  { %p3670_p7 = scmp.lt.s32.totalorder %s3668_s22, %s3664_s9 }
 0x1d9   :  { %p3671_p8 = por %p3670_p7, %p3669_p6 }
 0x1db   :  { %p3672_p9 = pnand %p3671_p8, %p3665_p5 }
 0x1dd   :  { %3675 = shalt.err (!%p3672_p9)
}
 0x1de   :  { %300 = dma.hbm_to_vmem [thread:$0]  %s4466_s23, 16, %s298_s7, [#allocation39]  }
 0x1df   :  { %3698 = dma.done.wait [#allocation3], 256  }
 0x1e0   :  { %3699 = vsyncadd [#allocation3], 4294967040 }
 0x1e1   :  { %3700 = dma.done.wait [#allocation6], 272  }
 0x1e2   :  { %3701 = vsyncadd [#allocation6], 4294967024 }
 0x1e3   :  { %3702 = dma.done.wait [#allocation9], 1040  }
 0x1e4   :  { %3703 = vsyncadd [#allocation9], 4294966256 }
 0x1e5   :  { %3704 = dma.done.wait [#allocation12], 1040  }
 0x1e6   :  { %3705 = vsyncadd [#allocation12], 4294966256 }
 0x1e7   :  { %3706 = dma.done.wait [#allocation15], 1040  }
 0x1e8   :  { %3707 = vsyncadd [#allocation15], 4294966256 }
 0x1e9   :  { %3708 = dma.done.wait [#allocation18], 1040  }
 0x1ea   :  { %3709 = vsyncadd [#allocation18], 4294966256 }
 0x1eb   :  { %3710 = dma.done.wait [#allocation21], 32  }
 0x1ec   :  { %3711 = vsyncadd [#allocation21], 4294967264 }
 0x1ed   :  { %3712 = dma.done.wait [#allocation24], 32  }
 0x1ee   :  { %3713 = vsyncadd [#allocation24], 4294967264 }
 0x1ef   :  { %3714 = dma.done.wait [#allocation27], 32  }
 0x1f0   :  { %3715 = vsyncadd [#allocation27], 4294967264 }
 0x1f1   :  { %3716 = dma.done.wait [#allocation30], 4112  }
 0x1f2   :  { %3717 = vsyncadd [#allocation30], 4294963184 }
 0x1f3   :  { %3718 = dma.done.wait [#allocation33], 4160  }
 0x1f4   :  { %3719 = vsyncadd [#allocation33], 4294963136 }
 0x1f5   :  { %3720 = dma.done.wait [#allocation36], 4160  }
 0x1f6   :  { %3721 = vsyncadd [#allocation36], 4294963136 }
 0x1f7   :  { %3722 = dma.done.wait [#allocation39], 16  }
 0x1f8   :  { %3723 = vsyncadd [#allocation39], 4294967280  ;;  %v3756_v0 = vmov 0.0   ;;  %v4225_v1 = vld [vmem:[#allocation2] sm:$0xff]  ;;  %v4227_v2 = vld [vmem:[#allocation2 + $0x8] sm:$0xff]  ;;  %vm3757_vm0 = vmmov 0  }
 0x1f9   :  { %2776 = vmatprep.subr.bf16.mxu0 %v3756_v0  ;;  %2796 = vmatprep.subr.bf16.mxu1 %v3756_v0  ;;  %v385_v3 = vmul.f32 %v4225_v1, %v4225_v1  ;;  %v2938_v4 = vld [vmem:[#allocation10] sm:$0xff]   ;;  %v386_v5 = vmul.f32 %v4227_v2, %v4227_v2  ;;  %v2940_v7 = vld [vmem:[#allocation10 + $0x8] sm:$0xff]   ;;  %v2942_v9 = vld [vmem:[#allocation10 + $0x10] sm:$0xff]   ;;  %vm866_vm1 = vcmask 523264   ;;  %vm991_vm2 = vcmask 1043456   ;;  %s3759_s23 = smov [#allocation40]  }
 0x1fa   :  { %378 = vadd.xlane.f32.xlu0 %v4225_v1  ;;  %2777 = vmatpush3.bf16.msra.mxu0 %v2938_v4  ;;  %v2939_v6 = vld [vmem:[#allocation13] sm:$0xff]   ;;  %v2941_v8 = vld [vmem:[#allocation13 + $0x8] sm:$0xff]   ;;  %v2943_v10 = vld [vmem:[#allocation13 + $0x10] sm:$0xff]   ;;  %vm963_vm3 = vcmask 64512  }
 0x1fb   :  { %387 = vadd.xlane.f32.xlu1 %v385_v3  ;;  %2778 = vmatprep.subr.bf16.mxu0 %v3756_v0  ;;  %v2944_v11 = vld [vmem:[#allocation10 + $0x18] sm:$0xff]   ;;  %v2946_v13 = vld [vmem:[#allocation10 + $0x20] sm:$0xff]   ;;  %v2948_v15 = vld [vmem:[#allocation10 + $0x28] sm:$0xff]  }
 0x1fc   :  { %2797 = vmatpush3.bf16.msra.mxu1 %v2939_v6  ;;  %v2945_v12 = vld [vmem:[#allocation13 + $0x18] sm:$0xff]   ;;  %v2947_v14 = vld [vmem:[#allocation13 + $0x20] sm:$0xff]   ;;  %2792 = vmatprep.mubr.msk.bf16.mxu0 %vm3757_vm0, %v3756_v0  ;;  %v2949_v16 = vld [vmem:[#allocation13 + $0x28] sm:$0xff]  }
 0x1fd   :  { %2798 = vmatprep.subr.bf16.mxu1 %v3756_v0  ;;  %2812 = vmatprep.mubr.msk.bf16.mxu1 %vm3757_vm0, %v3756_v0  ;;  %v2950_v17 = vld [vmem:[#allocation10 + $0x30] sm:$0xff]   ;;  %v2952_v19 = vld [vmem:[#allocation10 + $0x38] sm:$0xff]   ;;  %v2954_v47 = vld [vmem:[#allocation16] sm:$0xff]  }
 0x1fe   :  { %380 = vadd.xlane.f32.xlu0 %v4227_v2  ;;  %2779 = vmatpush3.bf16.msra.mxu0 %v2940_v7  ;;  %v2951_v18 = vld [vmem:[#allocation13 + $0x30] sm:$0xff]   ;;  %v2953_v20 = vld [vmem:[#allocation13 + $0x38] sm:$0xff]   ;;  %v2958_v52 = vld [vmem:[#allocation16 + $0x20] sm:$0xff]  }
 0x1ff   :  { %389 = vadd.xlane.f32.xlu1 %v386_v5  ;;  %2780 = vmatprep.subr.bf16.mxu0 %v3756_v0  ;;  %v2518_v38 = vld [vmem:[#allocation7] ss:$0 sm:$0xff]  ;;  %v2519_v43 = vld [vmem:[#allocation8] ss:$0 sm:$0xff]  ;;  %v2955_v49 = vld [vmem:[#allocation16 + $0x8] sm:$0xff]  }
 0x200   :  { %2799 = vmatpush3.bf16.msra.mxu1 %v2941_v8  ;;  %v2956_v50 = vld [vmem:[#allocation16 + $0x10] sm:$0xff]   ;;  %v2957_v51 = vld [vmem:[#allocation16 + $0x18] sm:$0xff]   ;;  %v2959_v53 = vld [vmem:[#allocation16 + $0x28] sm:$0xff]  }
 0x201   :  { %2800 = vmatprep.subr.bf16.mxu1 %v3756_v0  ;;  %v2960_v54 = vld [vmem:[#allocation16 + $0x30] sm:$0xff]   ;;  %v2961_v55 = vld [vmem:[#allocation16 + $0x38] sm:$0xff]  }
 0x202   :  { %2781 = vmatpush3.bf16.msra.mxu0 %v2942_v9  ;;  %v2531_v56 = vld [vmem:[#allocation14] ss:$0 sm:$0xff]  ;;  %v2520_v62 = vld [vmem:[#allocation11] ss:$0 sm:$0xff] }
 0x203   :  { %2782 = vmatprep.subr.bf16.mxu0 %v3756_v0 }
 0x204   :  { %2801 = vmatpush3.bf16.msra.mxu1 %v2943_v10 }
 0x205   :  { %2802 = vmatprep.subr.bf16.mxu1 %v3756_v0 }
 0x206   :  { %2783 = vmatpush3.bf16.msra.mxu0 %v2944_v11 }
 0x207   :  { %2784 = vmatprep.subr.bf16.mxu0 %v3756_v0 }
 0x208   :  { %2803 = vmatpush3.bf16.msra.mxu1 %v2945_v12 }
 0x209   :  { %2804 = vmatprep.subr.bf16.mxu1 %v3756_v0 }
 0x20a   :  { %2785 = vmatpush3.bf16.msra.mxu0 %v2946_v13  ;;  %v4293_v13 = vld [vmem:[#allocation17] ss:$0 sm:$0xff] }
 0x20b   :  { %2786 = vmatprep.subr.bf16.mxu0 %v3756_v0 }
 0x20c   :  { %2805 = vmatpush3.bf16.msra.mxu1 %v2947_v14 }
 0x20d   :  { %2806 = vmatprep.subr.bf16.mxu1 %v3756_v0 }
 0x20e   :  { %2787 = vmatpush3.bf16.msra.mxu0 %v2948_v15 }
 0x20f   :  { %2788 = vmatprep.subr.bf16.mxu0 %v3756_v0 }
 0x210   :  { %2807 = vmatpush3.bf16.msra.mxu1 %v2949_v16 }
 0x211   :  { %2808 = vmatprep.subr.bf16.mxu1 %v3756_v0 }
 0x212   :  { %2789 = vmatpush3.bf16.msra.mxu0 %v2950_v17 }
 0x213   :  { %2790 = vmatprep.subr.bf16.mxu0 %v3756_v0 }
 0x214   :  { %2809 = vmatpush3.bf16.msra.mxu1 %v2951_v18 }
 0x215   :  { %2810 = vmatprep.subr.bf16.mxu1 %v3756_v0 }
 0x216   :  { %2791 = vmatpush3.bf16.msra.mxu0 %v2952_v19 }
 0x217   :  { %2816 = vmatprep.subr.bf16.mxu0 %v3756_v0 }
 0x218   :  { %2811 = vmatpush3.bf16.msra.mxu1 %v2953_v20 }
 0x219   :  { %2836 = vmatprep.subr.bf16.mxu1 %v3756_v0 }
 0x287   :  { %v379_v21 = vpop.xlane.xlu0 %378 }
 0x288   :  { %v383_v22 = vmul.f32 0.0078125, %v379_v21  ;;  %v388_v23 = vpop.xlane.xlu1 %387 }
 0x289   :  { %v391_v25 = vmul.f32 0.0078125, %v388_v23 }
 0x28a   :  { %v393_v24 = vmul.f32 %v383_v22, %v383_v22  ;;  %v397_v35 = vsub.f32 %v4225_v1, %v383_v22 }
 0x28b   :  { %v381_v26 = vpop.xlane.xlu0 %380 }
 0x28c   :  { %v395_v27 = vsub.f32 %v391_v25, %v393_v24  ;;  %v384_v28 = vmul.f32 0.0078125, %v381_v26  ;;  %v390_v29 = vpop.xlane.xlu1 %389 }
 0x28d   :  { %v392_v32 = vmul.f32 0.0078125, %v390_v29 }
 0x28e   :  { %v399_v30 = vadd.f32 1e-05, %v395_v27  ;;  %v394_v31 = vmul.f32 %v384_v28, %v384_v28  ;;  %v398_v39 = vsub.f32 %v4227_v2, %v384_v28 }
 0x290   :  { %3098 = vrsqrt.f32 %v399_v30  ;;  %v396_v33 = vsub.f32 %v392_v32, %v394_v31 }
 0x292   :  { %v400_v34 = vadd.f32 1e-05, %v396_v33 }
 0x294   :  { %3100 = vrsqrt.f32 %v400_v34 }
 0x29a   :  { %v3099_v36 = vpop.eup %3098 }
 0x29b   :  { %v403_v37 = vmul.f32 %v3099_v36, %v397_v35 }
 0x29d   :  { %v411_v42 = vmul.f32 %v2518_v38, %v403_v37 }
 0x29e   :  { %v3101_v40 = vpop.eup %3100 }
 0x29f   :  { %v404_v41 = vmul.f32 %v3101_v40, %v398_v39  ;;  %v419_v45 = vadd.f32 %v2519_v43, %v411_v42 }
 0x2a1   :  { %v412_v44 = vmul.f32 %v2518_v38, %v404_v41 }
 0x2a3   :  { %v420_v46 = vadd.f32 %v2519_v43, %v412_v44 }
 0x2a5   :  { %v421_v48 = vpack.c.bf16 %v420_v46, %v419_v45  ;;  %v2540_v46 = vld [vmem:[#allocation25] ss:$0 sm:$0xff] }
 0x2a7   :  { %2793 = vmatmul.mubr.bf16.vlgmr.msra.gmra.mrb[0].mxu0 %v421_v48  ;;  %2813 = vmatmul.mubr.bf16.vlgmr.msra.gmra.mrb[0].mxu1 %v421_v48 }
 0x2a8   :  { %2817 = vmatpush3.bf16.msra.mxu0 %v2954_v47  ;;  %2832 = vmatprep.mubr.msk.bf16.mxu0 %vm3757_vm0, %v3756_v0 }
 0x2a9   :  { %2818 = vmatprep.subr.bf16.mxu0 %v3756_v0  ;;  %2838 = vmatprep.mubr.msk.bf16.mxu1 %vm3757_vm0, %v3756_v0 }
 0x2ac   :  { %2819 = vmatpush3.bf16.msra.mxu0 %v2955_v49  ;;  %v2541_v49 = vld [vmem:[#allocation26] ss:$0 sm:$0xff] }
 0x2ad   :  { %2820 = vmatprep.subr.bf16.mxu0 %v3756_v0 }
 0x2b0   :  { %2821 = vmatpush3.bf16.msra.mxu0 %v2956_v50 }
 0x2b1   :  { %2822 = vmatprep.subr.bf16.mxu0 %v3756_v0 }
 0x2b4   :  { %2823 = vmatpush3.bf16.msra.mxu0 %v2957_v51 }
 0x2b5   :  { %2824 = vmatprep.subr.bf16.mxu0 %v3756_v0 }
 0x2b8   :  { %2825 = vmatpush3.bf16.msra.mxu0 %v2958_v52 }
 0x2b9   :  { %2826 = vmatprep.subr.bf16.mxu0 %v3756_v0 }
 0x2bc   :  { %2827 = vmatpush3.bf16.msra.mxu0 %v2959_v53 }
 0x2bd   :  { %2828 = vmatprep.subr.bf16.mxu0 %v3756_v0 }
 0x2c0   :  { %2829 = vmatpush3.bf16.msra.mxu0 %v2960_v54  ;;  %v2529_v54 = vld [vmem:[#allocation22] ss:$0 sm:$0xff] }
 0x2c1   :  { %2830 = vmatprep.subr.bf16.mxu0 %v3756_v0 }
 0x2c4   :  { %2831 = vmatpush3.bf16.msra.mxu0 %v2961_v55 }
 0x2c5   :  { %2884 = vmatprep.subr.bf16.mxu0 %v3756_v0 }
 0x2c7   :  { %2833 = vmatmul.mubr.bf16.vlgmr.msra.gmra.mrb[4].mxu0 %v421_v48 }
 0x2c8   :  { %2900 = vmatprep.mubr.msk.bf16.mxu0 %vm3757_vm0, %v3756_v0 }
 0x37a   :  { %v527_v57 = vpop.f32.mrb[0].mxu0  ;;  %v683_v58 = vpop.f32.mrb[0].mxu1 }
 0x37b   :  { %v4271_v59 = vadd.f32 %v2531_v56, %v683_v58  ;;  %v2794_v60 = vpop.f32.mrb[1].mxu0  ;;  %v2814_v61 = vpop.f32.mrb[1].mxu1  ;;  %v4276_v5 = vadd.f32 %v2520_v62, %v527_v57 }
 0x37c   :  { %v530_v63 = vpop.f32.mrb[2].mxu0  ;;  %v686_v1 = vpop.f32.mrb[2].mxu1 }
 0x37d   :  { %692 = vadd.xlane.f32.xlu0 %v4271_v59  ;;  %v2795_v2 = vpop.f32.mrb[3].mxu0  ;;  %v2815_v3 = vpop.f32.mrb[3].mxu1  ;;  %v698_v4 = vmul.f32 %v4271_v59, %v4271_v59  ;;  %v4278_v6 = vadd.f32 %v2531_v56, %v686_v1  ;;  %v542_v7 = vmul.f32 %v4276_v5, %v4276_v5  ;;  %v4284_v8 = vadd.f32 %v2520_v62, %v530_v63 }
 0x37f   :  { %700 = vadd.xlane.f32.xlu1 %v698_v4  ;;  %v699_v9 = vmul.f32 %v4278_v6, %v4278_v6  ;;  %v543_v10 = vmul.f32 %v4284_v8, %v4284_v8 }
 0x381   :  { %536 = vadd.xlane.f32.xlu0 %v4276_v5 }
 0x383   :  { %694 = vadd.xlane.f32.xlu1 %v4278_v6 }
 0x385   :  { %544 = vadd.xlane.f32.xlu0 %v542_v7 }
 0x387   :  { %702 = vadd.xlane.f32.xlu1 %v699_v9 }
 0x389   :  { %538 = vadd.xlane.f32.xlu0 %v4284_v8 }
 0x38b   :  { %546 = vadd.xlane.f32.xlu1 %v543_v10 }
 0x39a   :  { %v4291_v11 = vpop.f32.mrb[4].mxu0 }
 0x39b   :  { %v2834_v12 = vpop.f32.mrb[5].mxu0  ;;  %v840_v10 = vadd.f32 %v4293_v13, %v4291_v11 }
 0x39c   :  { %v842_v14 = vpop.f32.mrb[6].mxu0 }
 0x39d   :  { %v4296_v15 = vadd.f32 %v4293_v13, %v842_v14  ;;  %v2835_v16 = vpop.f32.mrb[7].mxu0  ;;  %v4322_v13 = vld [vmem:[#allocation5] sm:$0xff] }
 0x40a   :  { %v693_v17 = vpop.xlane.xlu0 %692 }
 0x40b   :  { %v696_v18 = vmul.f32 0.0078125, %v693_v17 }
 0x40c   :  { %v701_v19 = vpop.xlane.xlu1 %700 }
 0x40d   :  { %v706_v20 = vmul.f32 %v696_v18, %v696_v18  ;;  %v704_v21 = vmul.f32 0.0078125, %v701_v19  ;;  %v710_v43 = vsub.f32 %v4271_v59, %v696_v18  ;;  %v2530_v59 = vld [vmem:[#allocation23] ss:$0 sm:$0xff] }
 0x40e   :  { %v537_v22 = vpop.xlane.xlu0 %536 }
 0x40f   :  { %v708_v23 = vsub.f32 %v704_v21, %v706_v20  ;;  %v540_v24 = vmul.f32 0.0078125, %v537_v22 }
 0x410   :  { %v695_v25 = vpop.xlane.xlu1 %694 }
 0x411   :  { %v712_v26 = vadd.f32 1e-05, %v708_v23  ;;  %v697_v27 = vmul.f32 0.0078125, %v695_v25  ;;  %v550_v29 = vmul.f32 %v540_v24, %v540_v24  ;;  %v554_v51 = vsub.f32 %v4276_v5, %v540_v24  ;;  %v4326_v25 = vld [vmem:[#allocation5 + $0x8] sm:$0xff] }
 0x412   :  { %v545_v28 = vpop.xlane.xlu0 %544 }
 0x413   :  { %3102 = vrsqrt.f32 %v712_v26  ;;  %v548_v30 = vmul.f32 0.0078125, %v545_v28  ;;  %v707_v32 = vmul.f32 %v697_v27, %v697_v27  ;;  %v711_v55 = vsub.f32 %v4278_v6, %v697_v27 }
 0x414   :  { %v703_v31 = vpop.xlane.xlu1 %702 }
 0x415   :  { %v552_v33 = vsub.f32 %v548_v30, %v550_v29  ;;  %v705_v34 = vmul.f32 0.0078125, %v703_v31 }
 0x416   :  { %v539_v35 = vpop.xlane.xlu0 %538 }
 0x417   :  { %v556_v36 = vadd.f32 1e-05, %v552_v33  ;;  %v709_v37 = vsub.f32 %v705_v34, %v707_v32  ;;  %v541_v38 = vmul.f32 0.0078125, %v539_v35 }
 0x418   :  { %v547_v39 = vpop.xlane.xlu1 %546 }
 0x419   :  { %3104 = vrsqrt.f32 %v556_v36  ;;  %v713_v40 = vadd.f32 1e-05, %v709_v37  ;;  %v551_v41 = vmul.f32 %v541_v38, %v541_v38  ;;  %v549_v42 = vmul.f32 0.0078125, %v547_v39 }
 0x41a   :  { %v555_v2 = vsub.f32 %v4284_v8, %v541_v38  ;;  %v4314_v8 = vpack.c.bf16 %v840_v10, %v840_v10 }
 0x41b   :  { %3106 = vrsqrt.f32 %v713_v40  ;;  %v553_v44 = vsub.f32 %v549_v42, %v551_v41 }
 0x41c   :  { %v993_v17 = vsel %vm991_vm2, %v4314_v8, 0 }
 0x41d   :  { %v3103_v45 = vpop.eup %3102  ;;  %v557_v47 = vadd.f32 1e-05, %v553_v44 }
 0x41e   :  { %v716_v48 = vmul.f32 %v3103_v45, %v710_v43  ;;  %v2679_v45 = vpack.c.bf16 %v4296_v15, %v4296_v15 }
 0x41f   :  { %3108 = vrsqrt.f32 %v557_v47 }
 0x420   :  { %v724_v50 = vmul.f32 %v2540_v46, %v716_v48  ;;  %v1039_v48 = vsel %vm991_vm2, %v2679_v45, 0 }
 0x422   :  { %v732_v52 = vadd.f32 %v2541_v49, %v724_v50 }
 0x423   :  { %v3105_v53 = vpop.eup %3104 }
 0x424   :  { %v560_v56 = vmul.f32 %v3105_v53, %v554_v51  ;;  %v4301_v57 = vpack.c.bf16 %v732_v52, %v732_v52 }
 0x425   :  { %v3107_v58 = vpop.eup %3106 }
 0x426   :  { %v871_v60 = vsel %vm866_vm1, %v4301_v57, 0  ;;  %v568_v61 = vmul.f32 %v2529_v54, %v560_v56  ;;  %v717_v62 = vmul.f32 %v3107_v58, %v711_v55 }
 0x427   :  { %2837 = vmatpush3.bf16.xpose.msra.mxu1 %v871_v60 }
 0x428   :  { %v576_v63 = vadd.f32 %v2530_v59, %v568_v61  ;;  %2842 = vmatprep.subr.bf16.mxu1 %v3756_v0  ;;  %v725_v1 = vmul.f32 %v2540_v46, %v717_v62 }
 0x429   :  { %v3109_v3 = vpop.eup %3108 }
 0x42a   :  { %v733_v4 = vadd.f32 %v2541_v49, %v725_v1  ;;  %v561_v5 = vmul.f32 %v3109_v3, %v555_v2  ;;  %v2674_v6 = vpack.c.bf16 %v576_v63, %v576_v63 }
 0x42c   :  { %v2677_v7 = vpack.c.bf16 %v733_v4, %v733_v4  ;;  %v569_v9 = vmul.f32 %v2529_v54, %v561_v5 }
 0x42e   :  { %2839 = vmatmul.mubr.msk.bf16.vlgmr.msra.gmra.mrb[4].mxu1 %vm866_vm1, %v2674_v6  ;;  %v917_v12 = vsel %vm866_vm1, %v2677_v7, 0  ;;  %v577_v14 = vadd.f32 %v2530_v59, %v569_v9 }
 0x42f   :  { %2843 = vmatpush3.bf16.xpose.msra.mxu1 %v917_v12  ;;  %2844 = vmatprep.mubr.msk.bf16.mxu1 %vm3757_vm0, %v3756_v0 }
 0x430   :  { %2848 = vmatprep.subr.bf16.mxu1 %v3756_v0  ;;  %v2675_v16 = vpack.c.bf16 %v577_v14, %v577_v14 }
 0x436   :  { %2845 = vmatmul.mubr.msk.bf16.vlgmr.msra.gmra.mrb[8].mxu1 %vm866_vm1, %v2675_v16 }
 0x437   :  { %2849 = vmatpush3.bf16.msra.mxu1 %v993_v17  ;;  %2850 = vmatprep.mubr.msk.bf16.mxu1 %vm3757_vm0, %v3756_v0 }
 0x438   :  { %2854 = vmatprep.subr.bf16.mxu1 %v3756_v0 }
 0x501   :  { %v907_v11 = vpop.f32.mrb[4].mxu1 }
 0x502   :  { %v959_v18 = vmul.f32 0.125, %v907_v11  ;;  %v2840_v19 = vpop.f32.mrb[5].mxu1 }
 0x503   :  { %v910_v20 = vpop.f32.mrb[6].mxu1 }
 0x504   :  { %v2841_v21 = vpop.f32.mrb[7].mxu1  ;;  %v961_v22 = vadd.f32 %v959_v18, %v4322_v13 }
 0x506   :  { %v964_v23 = vsel %vm963_vm3, %v961_v22, -inf }
 0x507   :  { %965 = vmax.xlane.f32.xlu0 %v964_v23 }
 0x509   :  { %v953_v24 = vpop.f32.mrb[8].mxu1 }
 0x50a   :  { %v960_v26 = vmul.f32 0.125, %v953_v24  ;;  %v2846_v27 = vpop.f32.mrb[9].mxu1 }
 0x50b   :  { %v956_v28 = vpop.f32.mrb[10].mxu1 }
 0x50c   :  { %v2847_v29 = vpop.f32.mrb[11].mxu1  ;;  %v962_v30 = vadd.f32 %v960_v26, %v4326_v25 }
 0x50e   :  { %v967_v31 = vsel %vm963_vm3, %v962_v30, -inf }
 0x50f   :  { %968 = vmax.xlane.f32.xlu1 %v967_v31 }
 0x594   :  { %v966_v32 = vpop.xlane.xlu0 %965 }
 0x595   :  { %v970_v33 = vsub.f32 %v961_v22, %v966_v32 }
 0x597   :  { %v972_v34 = vmul.f32 1.442695, %v970_v33 }
 0x599   :  { %3110 = vpow2.f32 %v972_v34 }
 0x59c   :  { %v969_v35 = vpop.xlane.xlu1 %968 }
 0x59d   :  { %v971_v36 = vsub.f32 %v962_v30, %v969_v35 }
 0x59f   :  { %v974_v37 = vmul.f32 1.442695, %v971_v36 }
 0x5a1   :  { %3112 = vpow2.f32 %v974_v37 }
 0x5a3   :  { %v3111_v38 = vpop.eup %3110 }
 0x5a4   :  { %v976_v39 = vsel %vm963_vm3, %v3111_v38, 0.0 }
 0x5a5   :  { %977 = vadd.xlane.f32.xlu0 %v976_v39  ;;  %v2962_v39 = vld [vmem:[#allocation19] sm:$0xff]  }
 0x5a6   :  { %2885 = vmatpush3.bf16.msra.mxu0 %v2962_v39  ;;  %v3758_v39 = vmov 0  }
 0x5a7   :  { %2886 = vmatprep.subr.bf16.mxu0 %v3756_v0 }
 0x5ab   :  { %v3113_v40 = vpop.eup %3112 }
 0x5ac   :  { %v979_v41 = vsel %vm963_vm3, %v3113_v40, 0.0 }
 0x5ad   :  { %980 = vadd.xlane.f32.xlu1 %v979_v41  ;;  %v2964_v41 = vld [vmem:[#allocation19 + $0x10] sm:$0xff]  }
 0x5bb   :  { %1085 = vrot.lane.b32.xlu0 %v4301_v57, %s3742_s15 }
 0x5be   :  { %1083 = vrot.lane.b32.xlu1 %v2674_v6, %s3742_s15 }
 0x5c2   :  { %1135 = vrot.lane.b32.xlu1 %v2677_v7, %s3742_s15 }
 0x5c6   :  { %1133 = vrot.lane.b32.xlu1 %v2675_v16, %s3742_s15 }
 0x632   :  { %v978_v42 = vpop.xlane.xlu0 %977 }
 0x633   :  { %3114 = vrcp.f32 %v978_v42  ;;  %v2965_v42 = vld [vmem:[#allocation19 + $0x18] sm:$0xff]  }
 0x636   :  { %v1086_v51 = vpop.permute.xlu0 %1085 }
 0x637   :  { %v1091_v15 = vsel %vm866_vm1, %v1086_v51, 0 }
 0x63a   :  { %v981_v43 = vpop.xlane.xlu1 %980 }
 0x63b   :  { %3116 = vrcp.f32 %v981_v43  ;;  %v2966_v43 = vld [vmem:[#allocation19 + $0x20] sm:$0xff]  }
 0x63d   :  { %v3115_v44 = vpop.eup %3114 }
 0x63e   :  { %v984_v46 = vmul.f32 %v3115_v44, %v3111_v38  ;;  %v1084_v53 = vpop.permute.xlu1 %1083  ;;  %v2967_v44 = vld [vmem:[#allocation19 + $0x28] sm:$0xff]  }
 0x640   :  { %v986_v47 = vpack.c.bf16 %v984_v46, %v984_v46  ;;  %v2969_v46 = vld [vmem:[#allocation19 + $0x38] sm:$0xff]  }
 0x642   :  { %2851 = vmatmul.mubr.msk.bf16.vlgmr.msra.gmra.mrb[12].mxu1 %vm963_vm3, %v986_v47  ;;  %v1136_v54 = vpop.permute.xlu1 %1135 }
 0x643   :  { %2855 = vmatpush3.bf16.msra.mxu1 %v1039_v48  ;;  %2856 = vmatprep.mubr.msk.bf16.mxu1 %vm3757_vm0, %v3756_v0  ;;  %v1141_v55 = vsel %vm866_vm1, %v1136_v54, 0 }
 0x644   :  { %2860 = vmatprep.subr.bf16.mxu1 %v3756_v0 }
 0x645   :  { %v3117_v49 = vpop.eup %3116 }
 0x646   :  { %v985_v50 = vmul.f32 %v3117_v49, %v3113_v40  ;;  %v1134_v56 = vpop.permute.xlu1 %1133  ;;  %v2963_v40 = vld [vmem:[#allocation19 + $0x8] sm:$0xff]  }
 0x647   :  { %2887 = vmatpush3.bf16.msra.mxu0 %v2963_v40  ;;  %v3006_v40 = vld [vmem:[#allocation31 + $0xc0] ss:$16 sps:$4 sm:$0xff]  }
 0x648   :  { %v987_v52 = vpack.c.bf16 %v985_v50, %v985_v50  ;;  %2888 = vmatprep.subr.bf16.mxu0 %v3756_v0 }
 0x64a   :  { %2857 = vmatmul.mubr.msk.bf16.vlgmr.msra.gmra.mrb[16].mxu1 %vm963_vm3, %v987_v52 }
 0x64b   :  { %2862 = vmatprep.mubr.msk.bf16.mxu1 %vm3757_vm0, %v3756_v0  ;;  %2889 = vmatpush3.bf16.msra.mxu0 %v2964_v41  ;;  %v3009_v41 = vld [vmem:[#allocation31 + $0xc8] ss:$16 sps:$4 sm:$0xff]  }
 0x64c   :  { %2861 = vmatpush3.bf16.xpose.msra.mxu1 %v1091_v15  ;;  %2890 = vmatprep.subr.bf16.mxu0 %v3756_v0 }
 0x64d   :  { %2866 = vmatprep.subr.bf16.mxu1 %v3756_v0 }
 0x64f   :  { %2891 = vmatpush3.bf16.msra.mxu0 %v2965_v42  ;;  %v3014_v42 = vld [vmem:[#allocation31 + $0xe4] ss:$16 sps:$4 sm:$0xff]  }
 0x650   :  { %2892 = vmatprep.subr.bf16.mxu0 %v3756_v0 }
 0x653   :  { %2863 = vmatmul.mubr.msk.bf16.vlgmr.msra.gmra.mrb[20].mxu1 %vm866_vm1, %v1084_v53  ;;  %2893 = vmatpush3.bf16.msra.mxu0 %v2966_v43  ;;  %v3017_v43 = vld [vmem:[#allocation31 + $0xec] ss:$16 sps:$4 sm:$0xff]  }
 0x654   :  { %2867 = vmatpush3.bf16.xpose.msra.mxu1 %v1141_v55  ;;  %2868 = vmatprep.mubr.msk.bf16.mxu1 %vm3757_vm0, %v3756_v0 }
 0x655   :  { %2872 = vmatprep.subr.bf16.mxu1 %v3756_v0  ;;  %2894 = vmatprep.subr.bf16.mxu0 %v3756_v0 }
 0x657   :  { %2895 = vmatpush3.bf16.msra.mxu0 %v2967_v44  ;;  %v3012_v44 = vld [vmem:[#allocation31 + $0xe0] ss:$16 sps:$4 sm:$0xff]  }
 0x658   :  { %2896 = vmatprep.subr.bf16.mxu0 %v3756_v0 }
 0x65b   :  { %2869 = vmatmul.mubr.msk.bf16.vlgmr.msra.gmra.mrb[24].mxu1 %vm866_vm1, %v1134_v56 }
 0x65c   :  { %2874 = vmatprep.mubr.msk.bf16.mxu1 %vm3757_vm0, %v3756_v0 }
 0x715   :  { %v4357_v57 = vpop.f32.mrb[12].mxu1 }
 0x716   :  { %v2852_v58 = vpop.f32.mrb[13].mxu1 }
 0x717   :  { %v1032_v59 = vpop.f32.mrb[14].mxu1 }
 0x718   :  { %v2853_v60 = vpop.f32.mrb[15].mxu1 }
 0x71d   :  { %v4359_v61 = vpop.f32.mrb[16].mxu1 }
 0x71e   :  { %v2858_v62 = vpop.f32.mrb[17].mxu1  ;;  %v1082_v58 = vpack.c.bf16 %v4359_v61, %v4359_v61 }
 0x71f   :  { %v1078_v63 = vpop.f32.mrb[18].mxu1 }
 0x720   :  { %v2859_v1 = vpop.f32.mrb[19].mxu1 }
 0x726   :  { %v1127_v2 = vpop.f32.mrb[20].mxu1 }
 0x727   :  { %v1183_v3 = vmul.f32 0.125, %v1127_v2  ;;  %v2864_v4 = vpop.f32.mrb[21].mxu1  ;;  %v2574_v2 = vld [vmem:[#allocation20] ss:$0 sm:$0xff] }
 0x728   :  { %v1130_v5 = vpop.f32.mrb[22].mxu1 }
 0x729   :  { %v2865_v6 = vpop.f32.mrb[23].mxu1  ;;  %v1185_v7 = vadd.f32 %v1183_v3, %v4322_v13  ;;  %v3146_v3 = vld [vmem:[#allocation2] sm:$0xff] }
 0x72b   :  { %v1187_v9 = vsel %vm963_vm3, %v1185_v7, -inf }
 0x72c   :  { %1188 = vmax.xlane.f32.xlu0 %v1187_v9  ;;  %v3147_v9 = vld [vmem:[#allocation2 + $0x8] sm:$0xff] }
 0x72e   :  { %v1177_v10 = vpop.f32.mrb[24].mxu1 }
 0x72f   :  { %v1184_v12 = vmul.f32 0.125, %v1177_v10  ;;  %v2870_v14 = vpop.f32.mrb[25].mxu1 }
 0x730   :  { %v1180_v16 = vpop.f32.mrb[26].mxu1 }
 0x731   :  { %v2871_v17 = vpop.f32.mrb[27].mxu1  ;;  %v1186_v11 = vadd.f32 %v1184_v12, %v4326_v25  ;;  %v2972_v16 = vld [vmem:[#allocation31 + $0x4] ss:$16 sps:$4 sm:$0xff]  }
 0x732   :  { %v2975_v17 = vld [vmem:[#allocation31 + $0xc] ss:$16 sps:$4 sm:$0xff]  }
 0x733   :  { %v1190_v18 = vsel %vm963_vm3, %v1186_v11, -inf }
 0x734   :  { %1191 = vmax.xlane.f32.xlu1 %v1190_v18  ;;  %v2973_v18 = vld [vmem:[#allocation31 + $0x8] ss:$16 sps:$4 sm:$0xff]  }
 0x745   :  { %1259 = vrot.lane.b32.xlu1 %v2679_v45, %s3742_s15  ;;  %v2968_v45 = vld [vmem:[#allocation19 + $0x30] sm:$0xff]  }
 0x746   :  { %2897 = vmatpush3.bf16.msra.mxu0 %v2968_v45  ;;  %v3015_v45 = vld [vmem:[#allocation31 + $0xe8] ss:$16 sps:$4 sm:$0xff]  }
 0x747   :  { %2898 = vmatprep.subr.bf16.mxu0 %v3756_v0 }
 0x74a   :  { %2899 = vmatpush3.bf16.msra.mxu0 %v2969_v46  ;;  %v3020_v46 = vld [vmem:[#allocation34 + $0x4] ss:$16 sps:$4 sm:$0xff]  }
 0x74b   :  { %1745 = vmatprep.subr.bf16.mxu0 %v2975_v17 }
 0x7b9   :  { %v1189_v19 = vpop.xlane.xlu0 %1188 }
 0x7ba   :  { %v1193_v20 = vsub.f32 %v1185_v7, %v1189_v19  ;;  %v2978_v19 = vld [vmem:[#allocation31 + $0x24] ss:$16 sps:$4 sm:$0xff]  }
 0x7bc   :  { %v1195_v21 = vmul.f32 1.442695, %v1193_v20  ;;  %v2981_v20 = vld [vmem:[#allocation31 + $0x2c] ss:$16 sps:$4 sm:$0xff]  }
 0x7be   :  { %3118 = vpow2.f32 %v1195_v21  ;;  %v2976_v21 = vld [vmem:[#allocation31 + $0x20] ss:$16 sps:$4 sm:$0xff]  }
 0x7c1   :  { %v1192_v13 = vpop.xlane.xlu1 %1191 }
 0x7c2   :  { %v1194_v22 = vsub.f32 %v1186_v11, %v1192_v13  ;;  %v2970_v11 = vld [vmem:[#allocation31] ss:$16 sps:$4 sm:$0xff]   ;;  %v2979_v13 = vld [vmem:[#allocation31 + $0x28] ss:$16 sps:$4 sm:$0xff]  }
 0x7c4   :  { %v1197_v23 = vmul.f32 1.442695, %v1194_v22  ;;  %v2984_v22 = vld [vmem:[#allocation31 + $0x44] ss:$16 sps:$4 sm:$0xff]  }
 0x7c5   :  { %v1260_v34 = vpop.permute.xlu1 %1259 }
 0x7c6   :  { %3120 = vpow2.f32 %v1197_v23  ;;  %v1265_v36 = vsel %vm991_vm2, %v1260_v34, 0  ;;  %v2987_v23 = vld [vmem:[#allocation31 + $0x4c] ss:$16 sps:$4 sm:$0xff]   ;;  %v3002_v34 = vld [vmem:[#allocation31 + $0xa4] ss:$16 sps:$4 sm:$0xff]  }
 0x7c8   :  { %v3119_v24 = vpop.eup %3118 }
 0x7c9   :  { %v1199_v26 = vsel %vm963_vm3, %v3119_v24, 0.0 }
 0x7ca   :  { %1200 = vadd.xlane.f32.xlu0 %v1199_v26  ;;  %v2985_v26 = vld [vmem:[#allocation31 + $0x48] ss:$16 sps:$4 sm:$0xff]  }
 0x7d0   :  { %v3121_v27 = vpop.eup %3120 }
 0x7d1   :  { %v1202_v25 = vsel %vm963_vm3, %v3121_v27, 0.0 }
 0x7d2   :  { %1203 = vadd.xlane.f32.xlu0 %v1202_v25  ;;  %v2993_v25 = vld [vmem:[#allocation31 + $0x6c] ss:$16 sps:$4 sm:$0xff]  }
 0x7e8   :  { %1211 = vrot.lane.b32.xlu0 %v4314_v8, %s3742_s15 }
 0x857   :  { %v1201_v28 = vpop.xlane.xlu0 %1200 }
 0x858   :  { %3122 = vrcp.f32 %v1201_v28  ;;  %v2988_v28 = vld [vmem:[#allocation31 + $0x60] ss:$16 sps:$4 sm:$0xff]  }
 0x85f   :  { %v1204_v29 = vpop.xlane.xlu0 %1203 }
 0x860   :  { %3124 = vrcp.f32 %v1204_v29  ;;  %v2991_v29 = vld [vmem:[#allocation31 + $0x68] ss:$16 sps:$4 sm:$0xff]  }
 0x862   :  { %v3123_v30 = vpop.eup %3122 }
 0x863   :  { %v1207_v31 = vmul.f32 %v3123_v30, %v3119_v24  ;;  %v1212_v32 = vpop.permute.xlu0 %1211  ;;  %v2982_v24 = vld [vmem:[#allocation31 + $0x40] ss:$16 sps:$4 sm:$0xff]  }
 0x864   :  { %v1217_v33 = vsel %vm991_vm2, %v1212_v32, 0  ;;  %v2994_v30 = vld [vmem:[#allocation31 + $0x80] ss:$16 sps:$4 sm:$0xff]   ;;  %v2997_v32 = vld [vmem:[#allocation31 + $0x88] ss:$16 sps:$4 sm:$0xff]  }
 0x865   :  { %2873 = vmatpush3.bf16.msra.mxu1 %v1217_v33  ;;  %v1209_v35 = vpack.c.bf16 %v1207_v31, %v1207_v31  ;;  %v2996_v31 = vld [vmem:[#allocation31 + $0x84] ss:$16 sps:$4 sm:$0xff]   ;;  %v2999_v33 = vld [vmem:[#allocation31 + $0x8c] ss:$16 sps:$4 sm:$0xff]  }
 0x866   :  { %2878 = vmatprep.subr.bf16.mxu1 %v3756_v0 }
 0x868   :  { %2875 = vmatmul.mubr.msk.bf16.vlgmr.msra.gmra.mrb[28].mxu1 %vm963_vm3, %v1209_v35  ;;  %v3005_v35 = vld [vmem:[#allocation31 + $0xac] ss:$16 sps:$4 sm:$0xff]  }
 0x869   :  { %2879 = vmatpush3.bf16.msra.mxu1 %v1265_v36  ;;  %2880 = vmatprep.mubr.msk.bf16.mxu1 %vm3757_vm0, %v3756_v0  ;;  %v1081_v0 = vpack.c.bf16 %v4357_v57, %v4357_v57  ;;  %v3000_v36 = vld [vmem:[#allocation31 + $0xa0] ss:$16 sps:$4 sm:$0xff]  }
 0x86a   :  { %v3125_v8 = vpop.eup %3124  ;;  %1702 = vmatprep.subr.bf16.mxu1 %v2972_v16  ;;  %v3021_v16 = vld [vmem:[#allocation34 + $0x8] ss:$16 sps:$4 sm:$0xff]  }
 0x86b   :  { %v1208_v37 = vmul.f32 %v3125_v8, %v3121_v27  ;;  %v2990_v27 = vld [vmem:[#allocation31 + $0x64] ss:$16 sps:$4 sm:$0xff]   ;;  %v3003_v8 = vld [vmem:[#allocation31 + $0xa8] ss:$16 sps:$4 sm:$0xff]  }
 0x86d   :  { %v1210_v38 = vpack.c.bf16 %v1208_v37, %v1208_v37  ;;  %v3008_v37 = vld [vmem:[#allocation31 + $0xc4] ss:$16 sps:$4 sm:$0xff]  }
 0x870   :  { %2881 = vmatmul.mubr.msk.bf16.vlgmr.msra.gmra.mrb[32].mxu1 %vm963_vm3, %v1210_v38  ;;  %v3011_v38 = vld [vmem:[#allocation31 + $0xcc] ss:$16 sps:$4 sm:$0xff]  }
 0x871   :  { %1703 = vmatpush1.bf16.msra.mxu1 %v2970_v11  ;;  %1734 = vmatprep.mubr.bf16.mxu1 %v3758_v39  ;;  %v3026_v11 = vld [vmem:[#allocation34 + $0x24] ss:$16 sps:$4 sm:$0xff]  }
 0x872   :  { %1704 = vmatprep.subr.bf16.mxu1 %v2978_v19  ;;  %v3024_v19 = vld [vmem:[#allocation34 + $0x20] ss:$16 sps:$4 sm:$0xff]  }
 0x875   :  { %1705 = vmatpush1.bf16.msra.mxu1 %v2976_v21  ;;  %v3032_v21 = vld [vmem:[#allocation34 + $0x44] ss:$16 sps:$4 sm:$0xff]  }
 0x876   :  { %1706 = vmatprep.subr.bf16.mxu1 %v2984_v22  ;;  %v3030_v22 = vld [vmem:[#allocation34 + $0x40] ss:$16 sps:$4 sm:$0xff]  }
 0x879   :  { %1707 = vmatpush1.bf16.msra.mxu1 %v2982_v24  ;;  %v3038_v24 = vld [vmem:[#allocation34 + $0x64] ss:$16 sps:$4 sm:$0xff]  }
 0x87a   :  { %1708 = vmatprep.subr.bf16.mxu1 %v2990_v27  ;;  %v3036_v27 = vld [vmem:[#allocation34 + $0x60] ss:$16 sps:$4 sm:$0xff]  }
 0x87d   :  { %1709 = vmatpush1.bf16.msra.mxu1 %v2988_v28  ;;  %v3044_v28 = vld [vmem:[#allocation34 + $0x84] ss:$16 sps:$4 sm:$0xff]  }
 0x87e   :  { %1710 = vmatprep.subr.bf16.mxu1 %v2996_v31  ;;  %v3045_v31 = vld [vmem:[#allocation34 + $0x88] ss:$16 sps:$4 sm:$0xff]  }
 0x881   :  { %1711 = vmatpush1.bf16.msra.mxu1 %v2994_v30  ;;  %v3042_v30 = vld [vmem:[#allocation34 + $0x80] ss:$16 sps:$4 sm:$0xff]  }
 0x882   :  { %1712 = vmatprep.subr.bf16.mxu1 %v3002_v34  ;;  %v3048_v34 = vld [vmem:[#allocation34 + $0xa0] ss:$16 sps:$4 sm:$0xff]  }
 0x885   :  { %1713 = vmatpush1.bf16.msra.mxu1 %v3000_v36  ;;  %v3056_v36 = vld [vmem:[#allocation34 + $0xc4] ss:$16 sps:$4 sm:$0xff]  }
 0x886   :  { %1714 = vmatprep.subr.bf16.mxu1 %v3008_v37  ;;  %v3054_v37 = vld [vmem:[#allocation34 + $0xc0] ss:$16 sps:$4 sm:$0xff]  }
 0x889   :  { %1715 = vmatpush1.bf16.msra.mxu1 %v3006_v40  ;;  %v3065_v40 = vld [vmem:[#allocation34 + $0xec] ss:$16 sps:$4 sm:$0xff]  }
 0x88a   :  { %1716 = vmatprep.subr.bf16.mxu1 %v3014_v42  ;;  %v3063_v42 = vld [vmem:[#allocation34 + $0xe8] ss:$16 sps:$4 sm:$0xff]  }
 0x88d   :  { %1717 = vmatpush1.bf16.msra.mxu1 %v3012_v44  ;;  %v3067_v44 = vld [vmem:[#allocation37 + $0xc0] sm:$0xff]  }
 0x88e   :  { %2002 = vmatprep.subr.bf16.mxu1 %v3020_v46  ;;  %v3069_v46 = vld [vmem:[#allocation37 + $0x80] sm:$0xff]  }
 0x93b   :  { %v1253_v47 = vpop.f32.mrb[28].mxu1 }
 0x93c   :  { %v1307_v48 = vpack.c.bf16 %v1253_v47, %v1253_v47  ;;  %v2876_v49 = vpop.f32.mrb[29].mxu1  ;;  %v3023_v47 = vld [vmem:[#allocation34 + $0xc] ss:$16 sps:$4 sm:$0xff]  }
 0x93d   :  { %v1256_v50 = vpop.f32.mrb[30].mxu1 }
 0x93e   :  { %1311 = vrot.lane.b32.xlu1 %v1307_v48, %s3742_s15  ;;  %v2877_v51 = vpop.f32.mrb[31].mxu1 }
 0x943   :  { %v1301_v52 = vpop.f32.mrb[32].mxu1 }
 0x944   :  { %v1308_v53 = vpack.c.bf16 %v1301_v52, %v1301_v52  ;;  %v2882_v15 = vpop.f32.mrb[33].mxu1 }
 0x945   :  { %v1304_v54 = vpop.f32.mrb[34].mxu1 }
 0x946   :  { %1313 = vrot.lane.b32.xlu1 %v1308_v53, %s3742_s15  ;;  %v2883_v55 = vpop.f32.mrb[35].mxu1  ;;  %s2494_s15 = sshll.u32 %s3759_s23, 4  ;;  %s2495_s15 = int_to_ptr.vmem [resolvable:$true] %s2494_s15 }
 0x947   :  { %s3676_s6 = scalar_lea.vmem %s2495_s15, 256  ;;  %p3681_p11 = scmp.lt.s32.totalorder %s2495_s15, %s2495_s15 }
 0x948   :  { %p3677_p10 = scmp.ne.s32.totalorder %s2495_s15, %s3676_s6  ;;  %p3682_p12 = scmp.lt.s32.totalorder %s3676_s6, %s3676_s6 }
 0x94a   :  { %p3683_p13 = por %p3682_p12, %p3681_p11 }
 0x94c   :  { %p3684_p0 = pnand %p3683_p13, %p3677_p10 }
 0x9b0   :  { %v1312_v56 = vpop.permute.xlu1 %1311 }
 0x9b1   :  { %v1317_v60 = vsel %vm866_vm1, %v1081_v0, %v1312_v56 }
 0x9b8   :  { %v1314_v59 = vpop.permute.xlu1 %1313 }
 0x9b9   :  { %v1320_v62 = vsel %vm866_vm1, %v1082_v58, %v1314_v59 }
 0x9ba   :  { %v2565_v63 = vcombine.low %v1317_v60, %v1320_v62 }
 0x9bc   :  { %2901 = vmatmul.mubr.bf16.vlgmr.msra.gmra.mrb[8].mxu0 %v2565_v63 }
 0x9bd   :  { %1746 = vmatpush1.bf16.msra.mxu0 %v2973_v18  ;;  %1777 = vmatprep.mubr.bf16.mxu0 %v3758_v39  ;;  %v3029_v18 = vld [vmem:[#allocation34 + $0x2c] ss:$16 sps:$4 sm:$0xff]  }
 0x9be   :  { %1747 = vmatprep.subr.bf16.mxu0 %v2981_v20  ;;  %v3027_v20 = vld [vmem:[#allocation34 + $0x28] ss:$16 sps:$4 sm:$0xff]  }
 0x9c1   :  { %1748 = vmatpush1.bf16.msra.mxu0 %v2979_v13  ;;  %v3035_v13 = vld [vmem:[#allocation34 + $0x4c] ss:$16 sps:$4 sm:$0xff]  }
 0x9c2   :  { %1749 = vmatprep.subr.bf16.mxu0 %v2987_v23  ;;  %v3033_v23 = vld [vmem:[#allocation34 + $0x48] ss:$16 sps:$4 sm:$0xff]  }
 0x9c5   :  { %1750 = vmatpush1.bf16.msra.mxu0 %v2985_v26  ;;  %v3041_v26 = vld [vmem:[#allocation34 + $0x6c] ss:$16 sps:$4 sm:$0xff]  }
 0x9c6   :  { %1751 = vmatprep.subr.bf16.mxu0 %v2993_v25  ;;  %v3039_v25 = vld [vmem:[#allocation34 + $0x68] ss:$16 sps:$4 sm:$0xff]  }
 0x9c9   :  { %1752 = vmatpush1.bf16.msra.mxu0 %v2991_v29  ;;  %v3047_v29 = vld [vmem:[#allocation34 + $0x8c] ss:$16 sps:$4 sm:$0xff]  }
 0x9ca   :  { %1753 = vmatprep.subr.bf16.mxu0 %v2999_v33  ;;  %v3053_v33 = vld [vmem:[#allocation34 + $0xac] ss:$16 sps:$4 sm:$0xff]  }
 0x9cd   :  { %1754 = vmatpush1.bf16.msra.mxu0 %v2997_v32  ;;  %v3050_v32 = vld [vmem:[#allocation34 + $0xa4] ss:$16 sps:$4 sm:$0xff]  }
 0x9ce   :  { %1755 = vmatprep.subr.bf16.mxu0 %v3005_v35  ;;  %v3051_v35 = vld [vmem:[#allocation34 + $0xa8] ss:$16 sps:$4 sm:$0xff]  }
 0x9d1   :  { %1756 = vmatpush1.bf16.msra.mxu0 %v3003_v8  ;;  %v3059_v8 = vld [vmem:[#allocation34 + $0xcc] ss:$16 sps:$4 sm:$0xff]  }
 0x9d2   :  { %1757 = vmatprep.subr.bf16.mxu0 %v3011_v38  ;;  %v3057_v38 = vld [vmem:[#allocation34 + $0xc8] ss:$16 sps:$4 sm:$0xff]  }
 0x9d5   :  { %1758 = vmatpush1.bf16.msra.mxu0 %v3009_v41  ;;  %v3060_v41 = vld [vmem:[#allocation34 + $0xe0] ss:$16 sps:$4 sm:$0xff]  }
 0x9d6   :  { %1759 = vmatprep.subr.bf16.mxu0 %v3017_v43  ;;  %v3066_v43 = vld [vmem:[#allocation37 + $0x40] sm:$0xff]  }
 0x9d9   :  { %1760 = vmatpush1.bf16.msra.mxu0 %v3015_v45  ;;  %v3068_v45 = vld [vmem:[#allocation37] sm:$0xff]  }
 0x9da   :  { %2045 = vmatprep.subr.bf16.mxu0 %v3023_v47  ;;  %v3070_v47 = vld [vmem:[#allocation37 + $0x48] sm:$0xff]  }
 0xa8f   :  { %v1425_v1 = vpop.f32.mrb[8].mxu0 }
 0xa90   :  { %v1432_v4 = vadd.f32 %v3146_v3, %v1425_v1  ;;  %v2902_v5 = vpop.f32.mrb[9].mxu0 }
 0xa91   :  { %v1428_v6 = vpop.f32.mrb[10].mxu0 }
 0xa92   :  { %v4392_v7 = vadd.f32 %v2574_v2, %v1432_v4  ;;  %v1433_v57 = vadd.f32 %v3147_v9, %v1428_v6  ;;  %v2903_v10 = vpop.f32.mrb[11].mxu0  ;;  %v2576_v9 = vld [vmem:[#allocation29] ss:$0 sm:$0xff] }
 0xa94   :  { %v4394_v12 = vadd.f32 %v2574_v2, %v1433_v57  ;;  %1445 = vadd.xlane.f32.xlu0 %v4392_v7  ;;  %v1451_v61 = vmul.f32 %v4392_v7, %v4392_v7  ;;  %v2575_v2 = vld [vmem:[#allocation28] ss:$0 sm:$0xff] }
 0xa96   :  { %1447 = vadd.xlane.f32.xlu1 %v4394_v12  ;;  %v1452_v14 = vmul.f32 %v4394_v12, %v4394_v12 }
 0xa98   :  { %1453 = vadd.xlane.f32.xlu0 %v1451_v61 }
 0xa9c   :  { %1455 = vadd.xlane.f32.xlu0 %v1452_v14  ;;  %v3018_v14 = vld [vmem:[#allocation34] ss:$16 sps:$4 sm:$0xff]  }
 0xb21   :  { %v1446_v48 = vpop.xlane.xlu0 %1445 }
 0xb22   :  { %v1449_v49 = vmul.f32 0.0078125, %v1446_v48  ;;  %v3071_v48 = vld [vmem:[#allocation37 + $0xc8] sm:$0xff]  }
 0xb23   :  { %v1448_v50 = vpop.xlane.xlu1 %1447 }
 0xb24   :  { %v1459_v52 = vmul.f32 %v1449_v49, %v1449_v49  ;;  %v1450_v53 = vmul.f32 0.0078125, %v1448_v50  ;;  %v1463_v62 = vsub.f32 %v4392_v7, %v1449_v49  ;;  %v3072_v49 = vld [vmem:[#allocation37 + $0x8] sm:$0xff]  }
 0xb25   :  { %v1454_v51 = vpop.xlane.xlu0 %1453  ;;  %v3073_v50 = vld [vmem:[#allocation37 + $0x88] sm:$0xff]  }
 0xb26   :  { %v1457_v15 = vmul.f32 0.0078125, %v1454_v51  ;;  %v1460_v56 = vmul.f32 %v1450_v53, %v1450_v53  ;;  %v1464_v3 = vsub.f32 %v4394_v12, %v1450_v53  ;;  %v3074_v51 = vld [vmem:[#allocation37 + $0x50] sm:$0xff]  }
 0xb27   :  { %v3076_v53 = vld [vmem:[#allocation37 + $0x10] sm:$0xff]  }
 0xb28   :  { %v1461_v54 = vsub.f32 %v1457_v15, %v1459_v52  ;;  %v3075_v52 = vld [vmem:[#allocation37 + $0xd0] sm:$0xff]  }
 0xb29   :  { %v1456_v55 = vpop.xlane.xlu0 %1455  ;;  %v3077_v15 = vld [vmem:[#allocation37 + $0x90] sm:$0xff]  }
 0xb2a   :  { %v1465_v0 = vadd.f32 1e-05, %v1461_v54  ;;  %v1458_v58 = vmul.f32 0.0078125, %v1456_v55  ;;  %v3078_v54 = vld [vmem:[#allocation37 + $0x58] sm:$0xff]  }
 0xb2b   :  { %v3079_v55 = vld [vmem:[#allocation37 + $0xd8] sm:$0xff]  }
 0xb2c   :  { %3126 = vrsqrt.f32 %v1465_v0  ;;  %v1462_v59 = vsub.f32 %v1458_v58, %v1460_v56  ;;  %v3080_v56 = vld [vmem:[#allocation37 + $0x18] sm:$0xff]   ;;  %v3082_v58 = vld [vmem:[#allocation37 + $0x60] sm:$0xff]  }
 0xb2d   :  { %v3081_v0 = vld [vmem:[#allocation37 + $0x98] sm:$0xff]  }
 0xb2e   :  { %v1466_v60 = vadd.f32 1e-05, %v1462_v59  ;;  %v3083_v59 = vld [vmem:[#allocation37 + $0xe0] sm:$0xff]  }
 0xb30   :  { %3128 = vrsqrt.f32 %v1466_v60  ;;  %v3084_v60 = vld [vmem:[#allocation37 + $0x20] sm:$0xff]  }
 0xb36   :  { %v3127_v63 = vpop.eup %3126 }
 0xb37   :  { %v1469_v1 = vmul.f32 %v3127_v63, %v1463_v62  ;;  %v3085_v62 = vld [vmem:[#allocation37 + $0xa0] sm:$0xff]   ;;  %v3086_v63 = vld [vmem:[#allocation37 + $0x68] sm:$0xff]  }
 0xb39   :  { %v1477_v6 = vmul.f32 %v2575_v2, %v1469_v1  ;;  %v3087_v1 = vld [vmem:[#allocation37 + $0xe8] sm:$0xff]  }
 0xb3a   :  { %v3129_v4 = vpop.eup %3128 }
 0xb3b   :  { %v1470_v5 = vmul.f32 %v3129_v4, %v1464_v3  ;;  %v1485_v10 = vadd.f32 %v2576_v9, %v1477_v6  ;;  %v3089_v3 = vld [vmem:[#allocation37 + $0xa8] sm:$0xff]   ;;  %v3090_v4 = vld [vmem:[#allocation37 + $0x70] sm:$0xff]  }
 0xb3c   :  { %v3092_v6 = vld [vmem:[#allocation37 + $0x30] sm:$0xff]  }
 0xb3d   :  { %v1478_v57 = vmul.f32 %v2575_v2, %v1470_v5  ;;  %v3088_v2 = vld [vmem:[#allocation37 + $0x28] sm:$0xff]   ;;  %v3091_v5 = vld [vmem:[#allocation37 + $0xf0] sm:$0xff]  }
 0xb3f   :  { %v1486_v61 = vadd.f32 %v2576_v9, %v1478_v57  ;;  %v3093_v9 = vld [vmem:[#allocation37 + $0xb0] sm:$0xff]   ;;  %v3094_v57 = vld [vmem:[#allocation37 + $0x78] sm:$0xff]  }
 0xb41   :  { %v4406_v17 = vpack.c.bf16 %v1486_v61, %v1485_v10  ;;  %v3095_v10 = vld [vmem:[#allocation37 + $0xf8] sm:$0xff]  }
 0xb42   :  { %v3096_v61 = vld [vmem:[#allocation37 + $0x38] sm:$0xff]  }
 0xb43   :  { %1735 = vmatmul.mubr.bf16.vlgmr.msra.gmra.mrb[36].mxu1 %v4406_v17  ;;  %1778 = vmatmul.mubr.bf16.vlgmr.msra.gmra.mrb[12].mxu0 %v4406_v17 }
 0xb44   :  { %2003 = vmatpush1.bf16.msra.mxu1 %v3018_v14  ;;  %2046 = vmatpush1.bf16.msra.mxu0 %v3021_v16  ;;  %v3097_v14 = vld [vmem:[#allocation37 + $0xb8] sm:$0xff]  }
 0xb45   :  { %2004 = vmatprep.subr.bf16.mxu1 %v3026_v11  ;;  %2047 = vmatprep.subr.bf16.mxu0 %v3029_v18 }
 0xb46   :  { %2034 = vmatprep.mubr.bf16.mxu1 %v3758_v39  ;;  %2077 = vmatprep.mubr.bf16.mxu0 %v3758_v39  ;;  %v3062_v39 = vld [vmem:[#allocation34 + $0xe4] ss:$16 sps:$4 sm:$0xff]  }
 0xb48   :  { %2005 = vmatpush1.bf16.msra.mxu1 %v3024_v19  ;;  %2048 = vmatpush1.bf16.msra.mxu0 %v3027_v20 }
 0xb49   :  { %2006 = vmatprep.subr.bf16.mxu1 %v3032_v21  ;;  %2049 = vmatprep.subr.bf16.mxu0 %v3035_v13 }
 0xb4c   :  { %2007 = vmatpush1.bf16.msra.mxu1 %v3030_v22  ;;  %2050 = vmatpush1.bf16.msra.mxu0 %v3033_v23  ;;  %v1522_v22 = vlaneseq }
 0xb4d   :  { %2008 = vmatprep.subr.bf16.mxu1 %v3038_v24  ;;  %2051 = vmatprep.subr.bf16.mxu0 %v3041_v26  ;;  %v1820_v24 = vld [vmem:[#allocation35] sm:$0xf] }
 0xb4e   :  { %v1523_v23 = vshrl.u32 %v1522_v22, 7 }
 0xb50   :  { %2009 = vmatpush1.bf16.msra.mxu1 %v3036_v27  ;;  %2052 = vmatpush1.bf16.msra.mxu0 %v3039_v25  ;;  %v1524_v26 = vsub.s32 0, %v1523_v23  ;;  %v1532_v27 = vsub.s32 2, %v1523_v23  ;;  %v1528_v25 = vsub.s32 1, %v1523_v23 }
 0xb51   :  { %2010 = vmatprep.subr.bf16.mxu1 %v3044_v28  ;;  %2053 = vmatprep.subr.bf16.mxu0 %v3047_v29  ;;  %v1536_v28 = vsub.s32 3, %v1523_v23 }
 0xb52   :  { %v1825_v29 = vrot.slane %v1820_v24, %v1524_v26 }
 0xb54   :  { %2011 = vmatpush1.bf16.msra.mxu1 %v3042_v30  ;;  %2054 = vmatpush1.bf16.msra.mxu0 %v3045_v31  ;;  %v1833_v30 = vrot.slane %v1820_v24, %v1532_v27  ;;  %v1829_v31 = vrot.slane %v1820_v24, %v1528_v25 }
 0xb55   :  { %2012 = vmatprep.subr.bf16.mxu1 %v3050_v32  ;;  %2055 = vmatprep.subr.bf16.mxu0 %v3053_v33  ;;  %v1837_v32 = vrot.slane %v1820_v24, %v1536_v28 }
 0xb58   :  { %2013 = vmatpush1.bf16.msra.mxu1 %v3048_v34  ;;  %2056 = vmatpush1.bf16.msra.mxu0 %v3051_v35 }
 0xb59   :  { %2014 = vmatprep.subr.bf16.mxu1 %v3056_v36  ;;  %2057 = vmatprep.subr.bf16.mxu0 %v3059_v8 }
 0xb5c   :  { %2015 = vmatpush1.bf16.msra.mxu1 %v3054_v37  ;;  %2058 = vmatpush1.bf16.msra.mxu0 %v3057_v38 }
 0xb5d   :  { %2016 = vmatprep.subr.bf16.mxu1 %v3062_v39  ;;  %2059 = vmatprep.subr.bf16.mxu0 %v3065_v40 }
 0xb60   :  { %2017 = vmatpush1.bf16.msra.mxu1 %v3060_v41  ;;  %2060 = vmatpush1.bf16.msra.mxu0 %v3063_v42 }
 0xb61   :  { %2732 = vmatprep.subr.bf16.mxu1 %v3066_v43  ;;  %2754 = vmatprep.subr.bf16.mxu0 %v3067_v44 }
 0xb63   :  { %2035 = vmatmul.mubr.bf16.vlgmr.msra.gmra.mrb[40].mxu1 %v4406_v17  ;;  %2078 = vmatmul.mubr.bf16.vlgmr.msra.gmra.mrb[16].mxu0 %v4406_v17 }
 0xb64   :  { %2733 = vmatpush3.bf16.msra.mxu1 %v3068_v45  ;;  %2755 = vmatpush3.bf16.msra.mxu0 %v3069_v46 }
 0xb65   :  { %2734 = vmatprep.subr.bf16.mxu1 %v3070_v47  ;;  %2756 = vmatprep.subr.bf16.mxu0 %v3071_v48 }
 0xb68   :  { %2735 = vmatpush3.bf16.msra.mxu1 %v3072_v49  ;;  %2757 = vmatpush3.bf16.msra.mxu0 %v3073_v50 }
 0xb69   :  { %2736 = vmatprep.subr.bf16.mxu1 %v3074_v51  ;;  %2758 = vmatprep.subr.bf16.mxu0 %v3075_v52 }
 0xb6c   :  { %2737 = vmatpush3.bf16.msra.mxu1 %v3076_v53  ;;  %2759 = vmatpush3.bf16.msra.mxu0 %v3077_v15 }
 0xb6d   :  { %2738 = vmatprep.subr.bf16.mxu1 %v3078_v54  ;;  %2760 = vmatprep.subr.bf16.mxu0 %v3079_v55  ;;  %v1520_v54 = vld [vmem:[#allocation32] sm:$0xf] }
 0xb70   :  { %2739 = vmatpush3.bf16.msra.mxu1 %v3080_v56  ;;  %2761 = vmatpush3.bf16.msra.mxu0 %v3081_v0  ;;  %v1525_v56 = vrot.slane %v1520_v54, %v1524_v26  ;;  %v1533_v0 = vrot.slane %v1520_v54, %v1532_v27 }
 0xb71   :  { %2740 = vmatprep.subr.bf16.mxu1 %v3082_v58  ;;  %2762 = vmatprep.subr.bf16.mxu0 %v3083_v59  ;;  %v1529_v58 = vrot.slane %v1520_v54, %v1528_v25  ;;  %v1537_v59 = vrot.slane %v1520_v54, %v1536_v28  ;;  %v2641_v54 = vld [vmem:[#allocation38] ss:$0 sm:$0xff] }
 0xb74   :  { %2741 = vmatpush3.bf16.msra.mxu1 %v3084_v60  ;;  %2763 = vmatpush3.bf16.msra.mxu0 %v3085_v62 }
 0xb75   :  { %2742 = vmatprep.subr.bf16.mxu1 %v3086_v63  ;;  %2764 = vmatprep.subr.bf16.mxu0 %v3087_v1 }
 0xb78   :  { %2743 = vmatpush3.bf16.msra.mxu1 %v3088_v2  ;;  %2765 = vmatpush3.bf16.msra.mxu0 %v3089_v3 }
 0xb79   :  { %2744 = vmatprep.subr.bf16.mxu1 %v3090_v4  ;;  %2766 = vmatprep.subr.bf16.mxu0 %v3091_v5 }
 0xb7c   :  { %2745 = vmatpush3.bf16.msra.mxu1 %v3092_v6  ;;  %2767 = vmatpush3.bf16.msra.mxu0 %v3093_v9 }
 0xb7d   :  { %2746 = vmatprep.subr.bf16.mxu1 %v3094_v57  ;;  %2768 = vmatprep.subr.bf16.mxu0 %v3095_v10 }
 0xb80   :  { %2747 = vmatpush3.bf16.msra.mxu1 %v3096_v61  ;;  %2769 = vmatpush3.bf16.msra.mxu0 %v3097_v14 }
 0xc16   :  { %v1736_v16 = vpop.f32.mrb[36].mxu1  ;;  %v1779_v17 = vpop.f32.mrb[12].mxu0 }
 0xc17   :  { %v1738_v11 = vpop.f32.mrb[37].mxu1  ;;  %v1781_v18 = vpop.f32.mrb[13].mxu0  ;;  %v1737_v63 = vadd.f32 %v1736_v16, %v1525_v56  ;;  %v1780_v1 = vadd.f32 %v1779_v17, %v1533_v0 }
 0xc18   :  { %v4414_v19 = vpop.f32.mrb[38].mxu1  ;;  %v4416_v20 = vpop.f32.mrb[14].mxu0  ;;  %v1739_v5 = vadd.f32 %v1738_v11, %v1529_v58  ;;  %v1782_v6 = vadd.f32 %v1781_v18, %v1537_v59 }
 0xc19   :  { %v4418_v21 = vpop.f32.mrb[39].mxu1  ;;  %v4420_v13 = vpop.f32.mrb[15].mxu0  ;;  %v1741_v61 = vadd.f32 %v4414_v19, %v1525_v56  ;;  %v1784_v26 = vadd.f32 %v4416_v20, %v1533_v0 }
 0xc36   :  { %v2036_v33 = vpop.f32.mrb[40].mxu1  ;;  %v2079_v34 = vpop.f32.mrb[16].mxu0 }
 0xc37   :  { %v2037_v35 = vadd.f32 %v2036_v33, %v1825_v29  ;;  %v2080_v36 = vadd.f32 %v2079_v34, %v1833_v30  ;;  %v2038_v8 = vpop.f32.mrb[41].mxu1  ;;  %v2081_v37 = vpop.f32.mrb[17].mxu0 }
 0xc38   :  { %v2039_v38 = vadd.f32 %v2038_v8, %v1829_v31  ;;  %v2082_v39 = vadd.f32 %v2081_v37, %v1837_v32  ;;  %v2040_v40 = vpop.f32.mrb[42].mxu1  ;;  %v2083_v41 = vpop.f32.mrb[18].mxu0 }
 0xc39   :  { %v2096_v42 = vmul.f32 0.70710677, %v2037_v35  ;;  %v2098_v43 = vmul.f32 0.70710677, %v2080_v36  ;;  %v2041_v46 = vadd.f32 %v2040_v40, %v1825_v29  ;;  %v2084_v47 = vadd.f32 %v2083_v41, %v1833_v30  ;;  %v2042_v48 = vpop.f32.mrb[43].mxu1  ;;  %v2085_v49 = vpop.f32.mrb[19].mxu0 }
 0xc3a   :  { %v2097_v44 = vmul.f32 0.70710677, %v2039_v38  ;;  %v2099_v45 = vmul.f32 0.70710677, %v2082_v39  ;;  %v2043_v50 = vadd.f32 %v2042_v48, %v1829_v31  ;;  %v2086_v51 = vadd.f32 %v2085_v49, %v1837_v32 }
 0xc3b   :  { %3130 = verf.f32 %v2096_v42  ;;  %v2100_v52 = vmul.f32 0.70710677, %v2041_v46  ;;  %v2102_v53 = vmul.f32 0.70710677, %v2084_v47  ;;  %v2088_v2 = vmul.f32 0.5, %v2037_v35 }
 0xc3c   :  { %3132 = verf.f32 %v2098_v43  ;;  %v2101_v15 = vmul.f32 0.70710677, %v2043_v50  ;;  %v2103_v55 = vmul.f32 0.70710677, %v2086_v51  ;;  %v2090_v9 = vmul.f32 0.5, %v2080_v36 }
 0xc3d   :  { %3134 = verf.f32 %v2097_v44  ;;  %v2089_v22 = vmul.f32 0.5, %v2039_v38  ;;  %v2091_v25 = vmul.f32 0.5, %v2082_v39  ;;  %v2092_v30 = vmul.f32 0.5, %v2041_v46 }
 0xc3e   :  { %3136 = verf.f32 %v2099_v45  ;;  %v2094_v33 = vmul.f32 0.5, %v2084_v47  ;;  %v2093_v36 = vmul.f32 0.5, %v2043_v50  ;;  %v2095_v20 = vmul.f32 0.5, %v2086_v51 }
 0xc3f   :  { %3138 = verf.f32 %v2100_v52  ;;  %v1743_v41 = vadd.f32 %v4418_v21, %v1529_v58  ;;  %v1786_v44 = vadd.f32 %v4420_v13, %v1537_v59 }
 0xc40   :  { %3140 = verf.f32 %v2102_v53 }
 0xc41   :  { %3142 = verf.f32 %v2101_v15 }
 0xc42   :  { %3144 = verf.f32 %v2103_v55 }
 0xc45   :  { %v3131_v60 = vpop.eup %3130 }
 0xc46   :  { %v3133_v62 = vpop.eup %3132  ;;  %v2112_v3 = vadd.f32 1.0, %v3131_v60 }
 0xc47   :  { %v3135_v4 = vpop.eup %3134  ;;  %v2114_v57 = vadd.f32 1.0, %v3133_v62 }
 0xc48   :  { %v3137_v10 = vpop.eup %3136  ;;  %v2120_v14 = vmul.f32 %v2112_v3, %v2088_v2  ;;  %v2113_v23 = vadd.f32 1.0, %v3135_v4 }
 0xc49   :  { %v3139_v24 = vpop.eup %3138  ;;  %v2122_v27 = vmul.f32 %v2114_v57, %v2090_v9  ;;  %v2115_v16 = vadd.f32 1.0, %v3137_v10 }
 0xc4a   :  { %v3141_v17 = vpop.eup %3140  ;;  %v2128_v28 = vmul.f32 %v2120_v14, %v1737_v63  ;;  %v2121_v29 = vmul.f32 %v2113_v23, %v2089_v22  ;;  %v2116_v11 = vadd.f32 1.0, %v3139_v24 }
 0xc4b   :  { %v3143_v18 = vpop.eup %3142  ;;  %v2130_v31 = vmul.f32 %v2122_v27, %v1780_v1  ;;  %v2123_v32 = vmul.f32 %v2115_v16, %v2091_v25  ;;  %v2118_v34 = vadd.f32 1.0, %v3141_v17 }
 0xc4c   :  { %v3145_v19 = vpop.eup %3144  ;;  %v2124_v35 = vmul.f32 %v2116_v11, %v2092_v30  ;;  %v2117_v8 = vadd.f32 1.0, %v3143_v18  ;;  %v2129_v37 = vmul.f32 %v2121_v29, %v1739_v5 }
 0xc4d   :  { %v2126_v38 = vmul.f32 %v2118_v34, %v2094_v33  ;;  %v2119_v40 = vadd.f32 1.0, %v3145_v19  ;;  %v2131_v39 = vmul.f32 %v2123_v32, %v1782_v6 }
 0xc4e   :  { %v2132_v42 = vmul.f32 %v2124_v35, %v1741_v61  ;;  %v2125_v43 = vmul.f32 %v2117_v8, %v2093_v36 }
 0xc4f   :  { %v2134_v45 = vmul.f32 %v2126_v38, %v1784_v26  ;;  %v2127_v46 = vmul.f32 %v2119_v40, %v2095_v20 }
 0xc50   :  { %v2133_v48 = vmul.f32 %v2125_v43, %v1743_v41  ;;  %v2136_v47 = vpack.c.bf16 %v2132_v42, %v2128_v28 }
 0xc51   :  { %v2135_v49 = vmul.f32 %v2127_v46, %v1786_v44  ;;  %v2138_v52 = vpack.c.bf16 %v2134_v45, %v2130_v31 }
 0xc52   :  { %v2137_v53 = vpack.c.bf16 %v2133_v48, %v2129_v37 }
 0xc53   :  { %v2139_v50 = vpack.c.bf16 %v2135_v49, %v2131_v39 }
 0xc54   :  { %2435 = vmatprep.mubr.bf16.mxu1 %v2137_v53 }
 0xc55   :  { %2476 = vmatprep.mubr.bf16.mxu0 %v2139_v50  ;;  %2436 = vmatmul.mubr.bf16.vlgmr.msra.gmra.mrb[44].mxu1 %v2136_v47 }
 0xc56   :  { %2477 = vmatmul.mubr.bf16.vlgmr.msra.gmra.mrb[20].mxu0 %v2138_v52 }
 0xd28   :  { %v2748_v51 = vpop.f32.mrb[44].mxu1 }
 0xd29   :  { %v2770_v15 = vpop.f32.mrb[20].mxu0  ;;  %v2749_v21 = vpop.f32.mrb[45].mxu1 }
 0xd2a   :  { %v2750_v55 = vadd.f32 %v2749_v21, %v2748_v51  ;;  %v2771_v56 = vpop.f32.mrb[21].mxu0  ;;  %v2751_v0 = vpop.f32.mrb[46].mxu1 }
 0xd2b   :  { %v2772_v13 = vadd.f32 %v2771_v56, %v2770_v15  ;;  %v2773_v58 = vpop.f32.mrb[22].mxu0  ;;  %v2752_v59 = vpop.f32.mrb[47].mxu1 }
 0xd2c   :  { %v2438_v60 = vadd.f32 %v2750_v55, %v2641_v54  ;;  %v2753_v62 = vadd.f32 %v2752_v59, %v2751_v0  ;;  %v2774_v63 = vpop.f32.mrb[23].mxu0 }
 0xd2d   :  { %v2775_v1 = vadd.f32 %v2774_v63, %v2773_v58 }
 0xd2e   :  { %v2479_v2 = vadd.f32 %v2772_v13, %v2438_v60  ;;  %v2441_v3 = vadd.f32 %v2753_v62, %v2641_v54 }
 0xd30   :  { %v2485_v4 = vadd.f32 %v2479_v2, %v4392_v7  ;;  %v2482_v5 = vadd.f32 %v2775_v1, %v2441_v3 }
 0xd32   :  { %2487 = vst [vmem:[#allocation40] sm:$0xff] %v2485_v4  ;;  %v2486_v6 = vadd.f32 %v2482_v5, %v4394_v12 }
 0xd34   :  { %2488 = vst [vmem:[#allocation40 + $0x8] sm:$0xff] %v2486_v6 }
 0xd35   :  { %3687 = shalt.err (!%p3684_p0)
}
 0xd36   :  { %s4503_s30 = sld [smem:[#allocation64_spill]] }
 0xd3c   :  { %s3688_s24 = scalar_lea.hbm %s4503_s30, 256 }
 0xd3d   :  { %p3689_p1 = scmp.ne.s32.totalorder %s4503_s30, %s3688_s24  ;;  %p3692_p2 = scmp.lt.u32.totalorder %s3688_s24, %s4503_s30 }
 0xd3f   :  { %p3694_p3 = pnand %p3692_p2, %p3689_p1 }
 0xd41   :  { %3697 = shalt.err (!%p3694_p3)
}
 0xd42   :  { %2500 = dma.vmem_to_hbm [thread:$0]  %s2495_s15, 256, %s4503_s30, [#allocation4], %s4498_s25, %s4498_s25, %s4497_s21  }
 0xd43   :  { %3724 = dma.done.wait [#allocation4], 256  }
 0xd44   :  { %3725 = vsyncadd [#allocation4], 4294967040 }
 0xd45   :  { %2504 = vsyncpa [#allocation3], 1 }
 0xd46   :  { %2505 = vsyncpa [#allocation6], 1 }
 0xd47   :  { %2506 = vsyncpa [#allocation9], 1 }
 0xd48   :  { %2507 = vsyncpa [#allocation12], 1 }
 0xd49   :  { %2508 = vsyncpa [#allocation15], 1 }
 0xd4a   :  { %2509 = vsyncpa [#allocation18], 1 }
 0xd4b   :  { %2510 = vsyncpa [#allocation21], 1 }
 0xd4c   :  { %2511 = vsyncpa [#allocation24], 1 }
 0xd4d   :  { %2512 = vsyncpa [#allocation27], 1 }
 0xd4e   :  { %2513 = vsyncpa [#allocation30], 1 }
 0xd4f   :  { %2514 = vsyncpa [#allocation33], 1 }
 0xd50   :  { %2515 = vsyncpa [#allocation36], 1 }
 0xd51   :  { %2516 = vsyncpa [#allocation39], 1 }
 0xd52   :  { %2517 = vsyncpa [#allocation4], 1 }

</bundles_post_ra>
